<compile_context>
chip_gen: v5e
topology: v5e:2x2
jax: 0.10.0
libtpu: 0.0.40
codegen_flags: <defaults>
</compile_context>

<pallas_src>
import functools
import math

import jax
import jax.numpy as jnp
from jax.experimental import pallas as pl
from jax.experimental.pallas import tpu as pltpu


# ----------------------------- kernel helpers -----------------------------

def _layer_norm(z, g, b, eps=1e-6):
    # torch.nn.LayerNorm: biased variance, eps inside the sqrt (eps=1e-6 in module).
    mu = jnp.mean(z, axis=-1, keepdims=True)
    var = jnp.mean((z - mu) ** 2, axis=-1, keepdims=True)
    return (z - mu) * jax.lax.rsqrt(var + eps) * g + b


def _attention(y, kv, bias, wq, wk, wv, wo, n_heads):
    """'global' multi-head attention for one batch row.

    y: (T, H) f32 query source, kv: (S, H) f32 key/value source,
    bias: (T, S) f32 additive mask (0 visible / -1e9 masked).
    wq/wk/wv: (n_heads, H, d) bf16 (q-scale already folded into wq),
    wo: (n_heads, d, H) bf16.  Returns (T, H) f32.
    """
    bf16 = jnp.bfloat16
    f32 = jnp.float32
    T, H = y.shape
    S = kv.shape[0]

    if n_heads == 1:
        # single head (enc-dec attention, head_size=1): plain 2-D matmuls.
        q = jnp.dot(y.astype(bf16), wq[0], preferred_element_type=f32)
        k = jnp.dot(kv.astype(bf16), wk[0], preferred_element_type=f32)
        v = jnp.dot(kv.astype(bf16), wv[0], preferred_element_type=f32)
        s = jax.lax.dot_general(q.astype(bf16), k.astype(bf16),
                                (((1,), (1,)), ((), ())),
                                preferred_element_type=f32) + bias
        m = jnp.max(s, axis=-1, keepdims=True)
        e = jnp.exp(s - m)
        p = (e * pl.reciprocal(jnp.sum(e, axis=-1, keepdims=True),
                               approx=True)).astype(bf16)
        o = jnp.dot(p, v.astype(bf16), preferred_element_type=f32)
        return jnp.dot(o.astype(bf16), wo[0], preferred_element_type=f32)

    # Multi-head: head axis as a leading batch dim -> one batched MXU push per
    # stage (no per-(batch, head) Python loops, no per-head lane slices).
    yb = jnp.broadcast_to(y.astype(bf16), (n_heads, T, H))
    kvb = yb if kv is y else jnp.broadcast_to(kv.astype(bf16), (n_heads, S, H))
    proj = (((2,), (1,)), ((0,), (0,)))                      # 'hta,had->htd'
    q = jax.lax.dot_general(yb, wq, proj, preferred_element_type=f32)
    k = jax.lax.dot_general(kvb, wk, proj, preferred_element_type=f32)
    v = jax.lax.dot_general(kvb, wv, proj, preferred_element_type=f32)
    s = jax.lax.dot_general(q.astype(bf16), k.astype(bf16),
                            (((2,), (2,)), ((0,), (0,))),    # 'htd,hsd->hts'
                            preferred_element_type=f32) + bias
    m = jnp.max(s, axis=-1, keepdims=True)
    e = jnp.exp(s - m)
    p = (e * pl.reciprocal(jnp.sum(e, axis=-1, keepdims=True),
                           approx=True)).astype(bf16)
    o = jax.lax.dot_general(p, v.astype(bf16),
                            (((2,), (1,)), ((0,), (0,))),    # 'hts,hsd->htd'
                            preferred_element_type=f32)
    # Per-head output projection folded over the head axis, reduced in registers
    # (replaces the masked 8-lane scratch stores + full-K matmul of v2).
    oh = jax.lax.dot_general(o.astype(bf16), wo,
                             (((2,), (1,)), ((0,), (0,))),   # 'htd,hdo->hto'
                             preferred_element_type=f32)
    return jnp.sum(oh, axis=0)


# ------------------------------ per-layer kernel ------------------------------

def decoder_layer_kernel(x_ref, enc_ref, sbias_ref, ibias_ref,
                         ln1g_ref, ln1b_ref, wq_ref, wk_ref, wv_ref, wo_ref,
                         ln2g_ref, ln2b_ref, wq2_ref, wk2_ref, wv2_ref, wo2_ref,
                         ln3g_ref, ln3b_ref, w1_ref, b1_ref, w2_ref, b2_ref,
                         lastg_ref, lastb_ref,
                         out_ref, x_scr, *, n_heads):
    bf16 = jnp.bfloat16
    layer = pl.program_id(1)

    @pl.when(layer == 0)
    def _():
        x_scr[...] = x_ref[0]            # load residual stream for this batch row

    x = x_scr[...]                       # (T, H) f32
    enc = enc_ref[0]                     # (S, H) f32

    # --- self attention sub-block (pre-norm, residual) ---
    y = _layer_norm(x, ln1g_ref[0], ln1b_ref[0])
    x = x + _attention(y, y, sbias_ref[0],
                       wq_ref[0], wk_ref[0], wv_ref[0], wo_ref[0], n_heads)

    # --- encoder-decoder attention sub-block (head_size = 1 in the reference) ---
    y = _layer_norm(x, ln2g_ref[0], ln2b_ref[0])
    x = x + _attention(y, enc, ibias_ref[0],
                       wq2_ref[0], wk2_ref[0], wv2_ref[0], wo2_ref[0], 1)

    # --- feed-forward sub-block: Linear -> ReLU -> Linear ---
    y = _layer_norm(x, ln3g_ref[0], ln3b_ref[0])
    h1 = jnp.dot(y.astype(bf16), w1_ref[0],
                 preferred_element_type=jnp.float32) + b1_ref[0]
    h1 = jnp.maximum(h1, 0.0)
    y = jnp.dot(h1.astype(bf16), w2_ref[0],
                preferred_element_type=jnp.float32) + b2_ref[0]
    x = x + y

    x_scr[...] = x                       # carry residual stream to next layer

    # --- Decoder.last_norm, written once per batch row after the last layer ---
    @pl.when(layer == pl.num_programs(1) - 1)
    def _():
        out_ref[0] = _layer_norm(x, lastg_ref[...], lastb_ref[...])


# ------------------------------ host wrapper ------------------------------

def decoder_forward(targets, enc_output, i_mask, t_self_mask, params, n_heads):
    B, T, H = targets.shape
    S = enc_output.shape[1]
    L = params["wq"].shape[0]

    x = targets.astype(jnp.float32)
    enc = enc_output.astype(jnp.float32)
    # masked_fill_(mask, -1e9) -> additive bias (identical after softmax underflow).
    sbias = t_self_mask.astype(jnp.float32) * jnp.float32(-1e9)
    ibias = i_mask.astype(jnp.float32) * jnp.float32(-1e9)

    def per_batch(shape):   # activations / masks: one batch row per grid step
        return pl.BlockSpec((1,) + shape[1:],
                            lambda b, l: (b,) + (0,) * (len(shape) - 1))

    def per_layer(shape):   # stacked weights: one layer slice per grid step
        return pl.BlockSpec((1,) + shape[1:],
                            lambda b, l: (l,) + (0,) * (len(shape) - 1))

    def shared(shape):      # last_norm params: same block every step
        return pl.BlockSpec(shape, lambda b, l: (0,) * len(shape))

    operands = [(x, per_batch(x.shape)),
                (enc, per_batch(enc.shape)),
                (sbias, per_batch(sbias.shape)),
                (ibias, per_batch(ibias.shape))]
    for name in ("ln1g", "ln1b", "wq", "wk", "wv", "wo",
                 "ln2g", "ln2b", "wq2", "wk2", "wv2", "wo2",
                 "ln3g", "ln3b", "w1", "b1", "w2", "b2"):
        arr = params[name]
        operands.append((arr, per_layer(arr.shape)))
    operands.append((params["lastg"], shared(params["lastg"].shape)))
    operands.append((params["lastb"], shared(params["lastb"].shape)))

    args = [a for a, _ in operands]
    in_specs = [s for _, s in operands]

    # Explicit scoped-VMEM budget: double-buffered per-step input blocks + output
    # block + residual-stream scratch + slack (clamped to sane per-gen limits).
    step_bytes = sum(math.prod(a.shape[1:]) * a.dtype.itemsize for a in args)
    out_bytes = T * H * 4
    vmem_limit = int(min(max(2 * step_bytes + 3 * out_bytes + (8 << 20),
                             16 << 20), 64 << 20))

    grid_spec = pltpu.PrefetchScalarGridSpec(
        num_scalar_prefetch=0,
        grid=(B, L),
        in_specs=in_specs,
        out_specs=pl.BlockSpec((1, T, H), lambda b, l: (b, 0, 0)),
        scratch_shapes=[pltpu.VMEM((T, H), jnp.float32)])

    out = pl.pallas_call(
        functools.partial(decoder_layer_kernel, n_heads=n_heads),
        out_shape=jax.ShapeDtypeStruct((B, T, H), jnp.float32),
        grid_spec=grid_spec,
        compiler_params=pltpu.CompilerParams(
            dimension_semantics=("parallel", "arbitrary"),
            vmem_limit_bytes=vmem_limit),
    )(*args)
    return out


# --------------------------- parameter construction ------------------------

def _xavier_linear(key, in_dim, out_dim):
    """torch xavier_uniform_ on an (out, in) weight; returned as (in, out) f32."""
    bound = (6.0 / (in_dim + out_dim)) ** 0.5
    w = jax.random.uniform(key, (out_dim, in_dim), jnp.float32, -bound, bound)
    return w.T


def _split_heads(w, n_heads):
    """(H, n_heads*d) -> (n_heads, H, d): head axis leading for batched dot_general."""
    H, HD = w.shape
    d = HD // n_heads
    return jnp.transpose(w.reshape(H, n_heads, d), (1, 0, 2))


def make_layer_params(key, H, F, n_heads):
    d = H // n_heads
    ks = jax.random.split(key, 10)
    bf16 = jnp.bfloat16
    return {
        "ln1g": jnp.ones((1, H), jnp.float32), "ln1b": jnp.zeros((1, H), jnp.float32),
        # self-attention (n_heads heads); q-scale d**-0.5 folded into wq.
        "wq": (_split_heads(_xavier_linear(ks[0], H, H), n_heads)
               * d ** -0.5).astype(bf16),
        "wk": _split_heads(_xavier_linear(ks[1], H, H), n_heads).astype(bf16),
        "wv": _split_heads(_xavier_linear(ks[2], H, H), n_heads).astype(bf16),
        "wo": _xavier_linear(ks[3], H, H).reshape(n_heads, d, H).astype(bf16),
        "ln2g": jnp.ones((1, H), jnp.float32), "ln2b": jnp.zeros((1, H), jnp.float32),
        # enc-dec attention: head_size=1, att_size=H, scale H**-0.5 folded into wq2.
        "wq2": (_xavier_linear(ks[4], H, H) * H ** -0.5).reshape(1, H, H).astype(bf16),
        "wk2": _xavier_linear(ks[5], H, H).reshape(1, H, H).astype(bf16),
        "wv2": _xavier_linear(ks[6], H, H).reshape(1, H, H).astype(bf16),
        "wo2": _xavier_linear(ks[7], H, H).reshape(1, H, H).astype(bf16),
        "ln3g": jnp.ones((1, H), jnp.float32), "ln3b": jnp.zeros((1, H), jnp.float32),
        "w1": _xavier_linear(ks[8], H, F).astype(bf16),
        "b1": jnp.zeros((1, F), jnp.float32),
        "w2": _xavier_linear(ks[9], F, H).astype(bf16),
        "b2": jnp.zeros((1, H), jnp.float32),
    }


def make_decoder_params(key, H, F, n_layers, n_heads):
    keys = jax.random.split(key, n_layers)
    layers = [make_layer_params(k, H, F, n_heads) for k in keys]
    stacked = {name: jnp.stack([lp[name] for lp in layers], axis=0)
               for name in layers[0]}
    stacked["lastg"] = jnp.ones((1, H), jnp.float32)
    stacked["lastb"] = jnp.zeros((1, H), jnp.float32)
    return stacked


# ----------------------------------- main -----------------------------------

if __name__ == "__main__":
    B, T, S, H, F = 2, 8, 8, 32, 64   # batch, tgt seq, src seq, hidden, filter
    n_heads, n_layers = 4, 2

    key = jax.random.PRNGKey(0)
    k_t, k_e, k_p = jax.random.split(key, 3)

    targets = jax.random.normal(k_t, (B, T, H), jnp.float32)
    enc_output = jax.random.normal(k_e, (B, S, H), jnp.float32)

    # causal self-attention mask (1 above diagonal = masked); no enc-dec masking.
    t_self_mask = jnp.broadcast_to(
        jnp.triu(jnp.ones((T, T), jnp.float32), k=1), (B, T, T))
    i_mask = jnp.zeros((B, T, S), jnp.float32)

    params = make_decoder_params(k_p, H, F, n_layers, n_heads)

    fwd = jax.jit(functools.partial(decoder_forward, n_heads=n_heads))
    out = fwd(targets, enc_output, i_mask, t_self_mask, params)
    jax.block_until_ready(out)
    assert out.shape == (B, T, H)
    print("KERNEL_OK")
</pallas_src>

<mosaic_0001>
module attributes {stable_mosaic.version = 11 : i64} {
  func.func @decoder_layer_kernel(%arg0: i32, %arg1: i32, %arg2: memref<1x8x32xf32, #tpu.memory_space<vmem>>, %arg3: memref<1x8x32xf32, #tpu.memory_space<vmem>>, %arg4: memref<1x8x8xf32, #tpu.memory_space<vmem>>, %arg5: memref<1x8x8xf32, #tpu.memory_space<vmem>>, %arg6: memref<1x1x32xf32, #tpu.memory_space<vmem>>, %arg7: memref<1x1x32xf32, #tpu.memory_space<vmem>>, %arg8: memref<1x4x32x8xbf16, #tpu.memory_space<vmem>>, %arg9: memref<1x4x32x8xbf16, #tpu.memory_space<vmem>>, %arg10: memref<1x4x32x8xbf16, #tpu.memory_space<vmem>>, %arg11: memref<1x4x8x32xbf16, #tpu.memory_space<vmem>>, %arg12: memref<1x1x32xf32, #tpu.memory_space<vmem>>, %arg13: memref<1x1x32xf32, #tpu.memory_space<vmem>>, %arg14: memref<1x1x32x32xbf16, #tpu.memory_space<vmem>>, %arg15: memref<1x1x32x32xbf16, #tpu.memory_space<vmem>>, %arg16: memref<1x1x32x32xbf16, #tpu.memory_space<vmem>>, %arg17: memref<1x1x32x32xbf16, #tpu.memory_space<vmem>>, %arg18: memref<1x1x32xf32, #tpu.memory_space<vmem>>, %arg19: memref<1x1x32xf32, #tpu.memory_space<vmem>>, %arg20: memref<1x32x64xbf16, #tpu.memory_space<vmem>>, %arg21: memref<1x1x64xf32, #tpu.memory_space<vmem>>, %arg22: memref<1x64x32xbf16, #tpu.memory_space<vmem>>, %arg23: memref<1x1x32xf32, #tpu.memory_space<vmem>>, %arg24: memref<1x32xf32, #tpu.memory_space<vmem>>, %arg25: memref<1x32xf32, #tpu.memory_space<vmem>>, %arg26: memref<1x8x32xf32, #tpu.memory_space<vmem>>, %arg27: memref<8x32xf32, #tpu.memory_space<vmem>>) attributes {dimension_semantics = [#tpu.dimension_semantics<parallel>, #tpu.dimension_semantics<arbitrary>], iteration_bounds = array<i64: 2, 2>, scalar_prefetch = 0 : i64, scratch_operands = 1 : i64, tpu.core_type = #tpu.core_type<tc>, window_params = [{transform_indices = @transform_0, window_bounds = array<i64: 1, 8, 32>}, {transform_indices = @transform_1, window_bounds = array<i64: 1, 8, 32>}, {transform_indices = @transform_2, window_bounds = array<i64: 1, 8, 8>}, {transform_indices = @transform_3, window_bounds = array<i64: 1, 8, 8>}, {transform_indices = @transform_4, window_bounds = array<i64: 1, 1, 32>}, {transform_indices = @transform_5, window_bounds = array<i64: 1, 1, 32>}, {transform_indices = @transform_6, window_bounds = array<i64: 1, 4, 32, 8>}, {transform_indices = @transform_7, window_bounds = array<i64: 1, 4, 32, 8>}, {transform_indices = @transform_8, window_bounds = array<i64: 1, 4, 32, 8>}, {transform_indices = @transform_9, window_bounds = array<i64: 1, 4, 8, 32>}, {transform_indices = @transform_10, window_bounds = array<i64: 1, 1, 32>}, {transform_indices = @transform_11, window_bounds = array<i64: 1, 1, 32>}, {transform_indices = @transform_12, window_bounds = array<i64: 1, 1, 32, 32>}, {transform_indices = @transform_13, window_bounds = array<i64: 1, 1, 32, 32>}, {transform_indices = @transform_14, window_bounds = array<i64: 1, 1, 32, 32>}, {transform_indices = @transform_15, window_bounds = array<i64: 1, 1, 32, 32>}, {transform_indices = @transform_16, window_bounds = array<i64: 1, 1, 32>}, {transform_indices = @transform_17, window_bounds = array<i64: 1, 1, 32>}, {transform_indices = @transform_18, window_bounds = array<i64: 1, 32, 64>}, {transform_indices = @transform_19, window_bounds = array<i64: 1, 1, 64>}, {transform_indices = @transform_20, window_bounds = array<i64: 1, 64, 32>}, {transform_indices = @transform_21, window_bounds = array<i64: 1, 1, 32>}, {pipeline_mode = #tpu.pipeline_mode<synchronous>, transform_indices = @transform_22, window_bounds = array<i64: 1, 32>}, {pipeline_mode = #tpu.pipeline_mode<synchronous>, transform_indices = @transform_23, window_bounds = array<i64: 1, 32>}, {transform_indices = @transform_24, window_bounds = array<i64: 1, 8, 32>}]} {
    %c0_i32 = arith.constant 0 : i32
    %0 = arith.cmpi eq, %arg1, %c0_i32 : i32
    %1 = arith.extui %0 : i1 to i32
    %c0_i32_0 = arith.constant 0 : i32
    %2 = arith.cmpi ne, %1, %c0_i32_0 : i32
    scf.if %2 {
      %c0_110 = arith.constant 0 : index
      %c0_111 = arith.constant 0 : index
      %c0_112 = arith.constant 0 : index
      %186 = vector.load %arg2[%c0_110, %c0_111, %c0_112] : memref<1x8x32xf32, #tpu.memory_space<vmem>>, vector<1x8x32xf32>
      %187 = vector.shape_cast %186 : vector<1x8x32xf32> to vector<8x32xf32>
      %c0_113 = arith.constant 0 : index
      %c0_114 = arith.constant 0 : index
      %188 = vector.load %arg27[%c0_113, %c0_114] : memref<8x32xf32, #tpu.memory_space<vmem>>, vector<8x32xf32>
      tpu.vector_store %arg27[%c0_113, %c0_114], %187 {strides = array<i32>} : memref<8x32xf32, #tpu.memory_space<vmem>>, vector<8x32xf32>,
    } else {
    }
    %c0 = arith.constant 0 : index
    %c0_1 = arith.constant 0 : index
    %3 = vector.load %arg27[%c0, %c0_1] : memref<8x32xf32, #tpu.memory_space<vmem>>, vector<8x32xf32>
    %c0_2 = arith.constant 0 : index
    %c0_3 = arith.constant 0 : index
    %c0_4 = arith.constant 0 : index
    %4 = vector.load %arg3[%c0_2, %c0_3, %c0_4] : memref<1x8x32xf32, #tpu.memory_space<vmem>>, vector<1x8x32xf32>
    %5 = vector.shape_cast %4 : vector<1x8x32xf32> to vector<8x32xf32>
    %c0_5 = arith.constant 0 : index
    %c0_6 = arith.constant 0 : index
    %c0_7 = arith.constant 0 : index
    %6 = vector.load %arg6[%c0_5, %c0_6, %c0_7] : memref<1x1x32xf32, #tpu.memory_space<vmem>>, vector<1x1x32xf32>
    %7 = vector.shape_cast %6 : vector<1x1x32xf32> to vector<1x32xf32>
    %c0_8 = arith.constant 0 : index
    %c0_9 = arith.constant 0 : index
    %c0_10 = arith.constant 0 : index
    %8 = vector.load %arg7[%c0_8, %c0_9, %c0_10] : memref<1x1x32xf32, #tpu.memory_space<vmem>>, vector<1x1x32xf32>
    %9 = vector.shape_cast %8 : vector<1x1x32xf32> to vector<1x32xf32>
    %cst = arith.constant dense<0.000000e+00> : vector<8xf32>
    %10 = vector.multi_reduction <add>, %3, %cst [1] : vector<8x32xf32> to vector<8xf32>
    %11 = vector.shape_cast %10 : vector<8xf32> to vector<8x1xf32>
    %cst_11 = arith.constant 3.200000e+01 : f32
    %12 = vector.broadcast %cst_11 : f32 to vector<8x1xf32>
    %13 = arith.divf %11, %12 : vector<8x1xf32>
    %14 = vector.broadcast %13 : vector<8x1xf32> to vector<8x32xf32>
    %15 = arith.subf %3, %14 : vector<8x32xf32>
    %16 = arith.mulf %15, %15 : vector<8x32xf32>
    %cst_12 = arith.constant dense<0.000000e+00> : vector<8xf32>
    %17 = vector.multi_reduction <add>, %16, %cst_12 [1] : vector<8x32xf32> to vector<8xf32>
    %18 = vector.shape_cast %17 : vector<8xf32> to vector<8x1xf32>
    %cst_13 = arith.constant 3.200000e+01 : f32
    %19 = vector.broadcast %cst_13 : f32 to vector<8x1xf32>
    %20 = arith.divf %18, %19 : vector<8x1xf32>
    %21 = vector.broadcast %13 : vector<8x1xf32> to vector<8x32xf32>
    %22 = arith.subf %3, %21 : vector<8x32xf32>
    %cst_14 = arith.constant 9.99999997E-7 : f32
    %23 = vector.broadcast %cst_14 : f32 to vector<8x1xf32>
    %24 = arith.addf %20, %23 : vector<8x1xf32>
    %25 = math.rsqrt %24 : vector<8x1xf32>
    %26 = vector.broadcast %25 : vector<8x1xf32> to vector<8x32xf32>
    %27 = arith.mulf %22, %26 : vector<8x32xf32>
    %28 = vector.broadcast %7 : vector<1x32xf32> to vector<8x32xf32>
    %29 = arith.mulf %27, %28 : vector<8x32xf32>
    %30 = vector.broadcast %9 : vector<1x32xf32> to vector<8x32xf32>
    %31 = arith.addf %29, %30 : vector<8x32xf32>
    %c0_15 = arith.constant 0 : index
    %c0_16 = arith.constant 0 : index
    %c0_17 = arith.constant 0 : index
    %32 = vector.load %arg4[%c0_15, %c0_16, %c0_17] : memref<1x8x8xf32, #tpu.memory_space<vmem>>, vector<1x8x8xf32>
    %33 = vector.shape_cast %32 : vector<1x8x8xf32> to vector<8x8xf32>
    %c0_18 = arith.constant 0 : index
    %c0_19 = arith.constant 0 : index
    %c0_20 = arith.constant 0 : index
    %c0_21 = arith.constant 0 : index
    %34 = vector.load %arg8[%c0_18, %c0_19, %c0_20, %c0_21] : memref<1x4x32x8xbf16, #tpu.memory_space<vmem>>, vector<1x4x32x8xbf16>
    %35 = vector.shape_cast %34 : vector<1x4x32x8xbf16> to vector<4x32x8xbf16>
    %c0_22 = arith.constant 0 : index
    %c0_23 = arith.constant 0 : index
    %c0_24 = arith.constant 0 : index
    %c0_25 = arith.constant 0 : index
    %36 = vector.load %arg9[%c0_22, %c0_23, %c0_24, %c0_25] : memref<1x4x32x8xbf16, #tpu.memory_space<vmem>>, vector<1x4x32x8xbf16>
    %37 = vector.shape_cast %36 : vector<1x4x32x8xbf16> to vector<4x32x8xbf16>
    %c0_26 = arith.constant 0 : index
    %c0_27 = arith.constant 0 : index
    %c0_28 = arith.constant 0 : index
    %c0_29 = arith.constant 0 : index
    %38 = vector.load %arg10[%c0_26, %c0_27, %c0_28, %c0_29] : memref<1x4x32x8xbf16, #tpu.memory_space<vmem>>, vector<1x4x32x8xbf16>
    %39 = vector.shape_cast %38 : vector<1x4x32x8xbf16> to vector<4x32x8xbf16>
    %c0_30 = arith.constant 0 : index
    %c0_31 = arith.constant 0 : index
    %c0_32 = arith.constant 0 : index
    %c0_33 = arith.constant 0 : index
    %40 = vector.load %arg11[%c0_30, %c0_31, %c0_32, %c0_33] : memref<1x4x8x32xbf16, #tpu.memory_space<vmem>>, vector<1x4x8x32xbf16>
    %41 = vector.shape_cast %40 : vector<1x4x8x32xbf16> to vector<4x8x32xbf16>
    %42 = arith.truncf %31 : vector<8x32xf32> to vector<8x32xbf16>
    %43 = vector.shape_cast %42 : vector<8x32xbf16> to vector<1x8x32xbf16>
    %44 = vector.broadcast %43 : vector<1x8x32xbf16> to vector<4x8x32xbf16>
    %cst_34 = arith.constant dense<0.000000e+00> : vector<4x8x8xf32>
    %45 = tpu.matmul %44, %35, %cst_34 {dimension_numbers = #tpu.dot_dimension_numbers<[2], [1], [1], [2], [0, 0, 0, 1, 1, 2], [0], [0]>} : vector<4x8x32xbf16>, vector<4x32x8xbf16>, vector<4x8x8xf32> -> vector<4x8x8xf32>
    %cst_35 = arith.constant dense<0.000000e+00> : vector<4x8x8xf32>
    %46 = tpu.matmul %44, %37, %cst_35 {dimension_numbers = #tpu.dot_dimension_numbers<[2], [1], [1], [2], [0, 0, 0, 1, 1, 2], [0], [0]>} : vector<4x8x32xbf16>, vector<4x32x8xbf16>, vector<4x8x8xf32> -> vector<4x8x8xf32>
    %cst_36 = arith.constant dense<0.000000e+00> : vector<4x8x8xf32>
    %47 = tpu.matmul %44, %39, %cst_36 {dimension_numbers = #tpu.dot_dimension_numbers<[2], [1], [1], [2], [0, 0, 0, 1, 1, 2], [0], [0]>} : vector<4x8x32xbf16>, vector<4x32x8xbf16>, vector<4x8x8xf32> -> vector<4x8x8xf32>
    %48 = arith.truncf %45 : vector<4x8x8xf32> to vector<4x8x8xbf16>
    %49 = arith.truncf %46 : vector<4x8x8xf32> to vector<4x8x8xbf16>
    %cst_37 = arith.constant dense<0.000000e+00> : vector<4x8x8xf32>
    %50 = tpu.matmul %48, %49, %cst_37 {dimension_numbers = #tpu.dot_dimension_numbers<[2], [2], [1], [1], [0, 0, 0, 1, 1, 1], [0], [0]>} : vector<4x8x8xbf16>, vector<4x8x8xbf16>, vector<4x8x8xf32> -> vector<4x8x8xf32>
    %51 = vector.shape_cast %33 : vector<8x8xf32> to vector<1x8x8xf32>
    %52 = vector.broadcast %51 : vector<1x8x8xf32> to vector<4x8x8xf32>
    %53 = arith.addf %50, %52 : vector<4x8x8xf32>
    %cst_38 = arith.constant dense<0xFF800000> : vector<4x8xf32>
    %54 = vector.multi_reduction <maximumf>, %53, %cst_38 [2] : vector<4x8x8xf32> to vector<4x8xf32>
    %55 = vector.shape_cast %54 : vector<4x8xf32> to vector<4x8x1xf32>
    %56 = vector.broadcast %55 : vector<4x8x1xf32> to vector<4x8x8xf32>
    %57 = arith.subf %53, %56 : vector<4x8x8xf32>
    %58 = math.exp %57 : vector<4x8x8xf32>
    %cst_39 = arith.constant dense<0.000000e+00> : vector<4x8xf32>
    %59 = vector.multi_reduction <add>, %58, %cst_39 [2] : vector<4x8x8xf32> to vector<4x8xf32>
    %60 = vector.shape_cast %59 : vector<4x8xf32> to vector<4x8x1xf32>
    %61 = tpu.reciprocal %60 {approx = true} : vector<4x8x1xf32> -> vector<4x8x1xf32>
    %62 = vector.broadcast %61 : vector<4x8x1xf32> to vector<4x8x8xf32>
    %63 = arith.mulf %58, %62 : vector<4x8x8xf32>
    %64 = arith.truncf %63 : vector<4x8x8xf32> to vector<4x8x8xbf16>
    %65 = arith.truncf %47 : vector<4x8x8xf32> to vector<4x8x8xbf16>
    %cst_40 = arith.constant dense<0.000000e+00> : vector<4x8x8xf32>
    %66 = tpu.matmul %64, %65, %cst_40 {dimension_numbers = #tpu.dot_dimension_numbers<[2], [1], [1], [2], [0, 0, 0, 1, 1, 2], [0], [0]>} : vector<4x8x8xbf16>, vector<4x8x8xbf16>, vector<4x8x8xf32> -> vector<4x8x8xf32>
    %67 = arith.truncf %66 : vector<4x8x8xf32> to vector<4x8x8xbf16>
    %cst_41 = arith.constant dense<0.000000e+00> : vector<4x8x32xf32>
    %68 = tpu.matmul %67, %41, %cst_41 {dimension_numbers = #tpu.dot_dimension_numbers<[2], [1], [1], [2], [0, 0, 0, 1, 1, 2], [0], [0]>} : vector<4x8x8xbf16>, vector<4x8x32xbf16>, vector<4x8x32xf32> -> vector<4x8x32xf32>
    %cst_42 = arith.constant dense<0.000000e+00> : vector<8x32xf32>
    %69 = vector.multi_reduction <add>, %68, %cst_42 [0] : vector<4x8x32xf32> to vector<8x32xf32>
    %70 = arith.addf %3, %69 : vector<8x32xf32>
    %c0_43 = arith.constant 0 : index
    %c0_44 = arith.constant 0 : index
    %c0_45 = arith.constant 0 : index
    %71 = vector.load %arg12[%c0_43, %c0_44, %c0_45] : memref<1x1x32xf32, #tpu.memory_space<vmem>>, vector<1x1x32xf32>
    %72 = vector.shape_cast %71 : vector<1x1x32xf32> to vector<1x32xf32>
    %c0_46 = arith.constant 0 : index
    %c0_47 = arith.constant 0 : index
    %c0_48 = arith.constant 0 : index
    %73 = vector.load %arg13[%c0_46, %c0_47, %c0_48] : memref<1x1x32xf32, #tpu.memory_space<vmem>>, vector<1x1x32xf32>
    %74 = vector.shape_cast %73 : vector<1x1x32xf32> to vector<1x32xf32>
    %cst_49 = arith.constant dense<0.000000e+00> : vector<8xf32>
    %75 = vector.multi_reduction <add>, %70, %cst_49 [1] : vector<8x32xf32> to vector<8xf32>
    %76 = vector.shape_cast %75 : vector<8xf32> to vector<8x1xf32>
    %cst_50 = arith.constant 3.200000e+01 : f32
    %77 = vector.broadcast %cst_50 : f32 to vector<8x1xf32>
    %78 = arith.divf %76, %77 : vector<8x1xf32>
    %79 = vector.broadcast %78 : vector<8x1xf32> to vector<8x32xf32>
    %80 = arith.subf %70, %79 : vector<8x32xf32>
    %81 = arith.mulf %80, %80 : vector<8x32xf32>
    %cst_51 = arith.constant dense<0.000000e+00> : vector<8xf32>
    %82 = vector.multi_reduction <add>, %81, %cst_51 [1] : vector<8x32xf32> to vector<8xf32>
    %83 = vector.shape_cast %82 : vector<8xf32> to vector<8x1xf32>
    %cst_52 = arith.constant 3.200000e+01 : f32
    %84 = vector.broadcast %cst_52 : f32 to vector<8x1xf32>
    %85 = arith.divf %83, %84 : vector<8x1xf32>
    %86 = vector.broadcast %78 : vector<8x1xf32> to vector<8x32xf32>
    %87 = arith.subf %70, %86 : vector<8x32xf32>
    %cst_53 = arith.constant 9.99999997E-7 : f32
    %88 = vector.broadcast %cst_53 : f32 to vector<8x1xf32>
    %89 = arith.addf %85, %88 : vector<8x1xf32>
    %90 = math.rsqrt %89 : vector<8x1xf32>
    %91 = vector.broadcast %90 : vector<8x1xf32> to vector<8x32xf32>
    %92 = arith.mulf %87, %91 : vector<8x32xf32>
    %93 = vector.broadcast %72 : vector<1x32xf32> to vector<8x32xf32>
    %94 = arith.mulf %92, %93 : vector<8x32xf32>
    %95 = vector.broadcast %74 : vector<1x32xf32> to vector<8x32xf32>
    %96 = arith.addf %94, %95 : vector<8x32xf32>
    %c0_54 = arith.constant 0 : index
    %c0_55 = arith.constant 0 : index
    %c0_56 = arith.constant 0 : index
    %97 = vector.load %arg5[%c0_54, %c0_55, %c0_56] : memref<1x8x8xf32, #tpu.memory_space<vmem>>, vector<1x8x8xf32>
    %98 = vector.shape_cast %97 : vector<1x8x8xf32> to vector<8x8xf32>
    %c0_57 = arith.constant 0 : index
    %c0_58 = arith.constant 0 : index
    %c0_59 = arith.constant 0 : index
    %c0_60 = arith.constant 0 : index
    %99 = vector.load %arg14[%c0_57, %c0_58, %c0_59, %c0_60] : memref<1x1x32x32xbf16, #tpu.memory_space<vmem>>, vector<1x1x32x32xbf16>
    %100 = vector.shape_cast %99 : vector<1x1x32x32xbf16> to vector<1x32x32xbf16>
    %c0_61 = arith.constant 0 : index
    %c0_62 = arith.constant 0 : index
    %c0_63 = arith.constant 0 : index
    %c0_64 = arith.constant 0 : index
    %101 = vector.load %arg15[%c0_61, %c0_62, %c0_63, %c0_64] : memref<1x1x32x32xbf16, #tpu.memory_space<vmem>>, vector<1x1x32x32xbf16>
    %102 = vector.shape_cast %101 : vector<1x1x32x32xbf16> to vector<1x32x32xbf16>
    %c0_65 = arith.constant 0 : index
    %c0_66 = arith.constant 0 : index
    %c0_67 = arith.constant 0 : index
    %c0_68 = arith.constant 0 : index
    %103 = vector.load %arg16[%c0_65, %c0_66, %c0_67, %c0_68] : memref<1x1x32x32xbf16, #tpu.memory_space<vmem>>, vector<1x1x32x32xbf16>
    %104 = vector.shape_cast %103 : vector<1x1x32x32xbf16> to vector<1x32x32xbf16>
    %c0_69 = arith.constant 0 : index
    %c0_70 = arith.constant 0 : index
    %c0_71 = arith.constant 0 : index
    %c0_72 = arith.constant 0 : index
    %105 = vector.load %arg17[%c0_69, %c0_70, %c0_71, %c0_72] : memref<1x1x32x32xbf16, #tpu.memory_space<vmem>>, vector<1x1x32x32xbf16>
    %106 = vector.shape_cast %105 : vector<1x1x32x32xbf16> to vector<1x32x32xbf16>
    %107 = arith.truncf %96 : vector<8x32xf32> to vector<8x32xbf16>
    %108 = vector.shape_cast %100 : vector<1x32x32xbf16> to vector<32x32xbf16>
    %cst_73 = arith.constant dense<0.000000e+00> : vector<8x32xf32>
    %109 = tpu.matmul %107, %108, %cst_73 {dimension_numbers = #tpu.dot_dimension_numbers<[1], [0], [0], [1], [0, 0, 1, 1], [], []>} : vector<8x32xbf16>, vector<32x32xbf16>, vector<8x32xf32> -> vector<8x32xf32>
    %110 = arith.truncf %5 : vector<8x32xf32> to vector<8x32xbf16>
    %111 = vector.shape_cast %102 : vector<1x32x32xbf16> to vector<32x32xbf16>
    %cst_74 = arith.constant dense<0.000000e+00> : vector<8x32xf32>
    %112 = tpu.matmul %110, %111, %cst_74 {dimension_numbers = #tpu.dot_dimension_numbers<[1], [0], [0], [1], [0, 0, 1, 1], [], []>} : vector<8x32xbf16>, vector<32x32xbf16>, vector<8x32xf32> -> vector<8x32xf32>
    %113 = arith.truncf %5 : vector<8x32xf32> to vector<8x32xbf16>
    %114 = vector.shape_cast %104 : vector<1x32x32xbf16> to vector<32x32xbf16>
    %cst_75 = arith.constant dense<0.000000e+00> : vector<8x32xf32>
    %115 = tpu.matmul %113, %114, %cst_75 {dimension_numbers = #tpu.dot_dimension_numbers<[1], [0], [0], [1], [0, 0, 1, 1], [], []>} : vector<8x32xbf16>, vector<32x32xbf16>, vector<8x32xf32> -> vector<8x32xf32>
    %116 = arith.truncf %109 : vector<8x32xf32> to vector<8x32xbf16>
    %117 = arith.truncf %112 : vector<8x32xf32> to vector<8x32xbf16>
    %cst_76 = arith.constant dense<0.000000e+00> : vector<8x8xf32>
    %118 = tpu.matmul %116, %117, %cst_76 {dimension_numbers = #tpu.dot_dimension_numbers<[1], [1], [0], [0], [0, 0, 1, 0], [], []>} : vector<8x32xbf16>, vector<8x32xbf16>, vector<8x8xf32> -> vector<8x8xf32>
    %119 = arith.addf %118, %98 : vector<8x8xf32>
    %cst_77 = arith.constant dense<0xFF800000> : vector<8xf32>
    %120 = vector.multi_reduction <maximumf>, %119, %cst_77 [1] : vector<8x8xf32> to vector<8xf32>
    %121 = vector.shape_cast %120 : vector<8xf32> to vector<8x1xf32>
    %122 = vector.broadcast %121 : vector<8x1xf32> to vector<8x8xf32>
    %123 = arith.subf %119, %122 : vector<8x8xf32>
    %124 = math.exp %123 : vector<8x8xf32>
    %cst_78 = arith.constant dense<0.000000e+00> : vector<8xf32>
    %125 = vector.multi_reduction <add>, %124, %cst_78 [1] : vector<8x8xf32> to vector<8xf32>
    %126 = vector.shape_cast %125 : vector<8xf32> to vector<8x1xf32>
    %127 = tpu.reciprocal %126 {approx = true} : vector<8x1xf32> -> vector<8x1xf32>
    %128 = vector.broadcast %127 : vector<8x1xf32> to vector<8x8xf32>
    %129 = arith.mulf %124, %128 : vector<8x8xf32>
    %130 = arith.truncf %129 : vector<8x8xf32> to vector<8x8xbf16>
    %131 = arith.truncf %115 : vector<8x32xf32> to vector<8x32xbf16>
    %cst_79 = arith.constant dense<0.000000e+00> : vector<8x32xf32>
    %132 = tpu.matmul %130, %131, %cst_79 {dimension_numbers = #tpu.dot_dimension_numbers<[1], [0], [0], [1], [0, 0, 1, 1], [], []>} : vector<8x8xbf16>, vector<8x32xbf16>, vector<8x32xf32> -> vector<8x32xf32>
    %133 = arith.truncf %132 : vector<8x32xf32> to vector<8x32xbf16>
    %134 = vector.shape_cast %106 : vector<1x32x32xbf16> to vector<32x32xbf16>
    %cst_80 = arith.constant dense<0.000000e+00> : vector<8x32xf32>
    %135 = tpu.matmul %133, %134, %cst_80 {dimension_numbers = #tpu.dot_dimension_numbers<[1], [0], [0], [1], [0, 0, 1, 1], [], []>} : vector<8x32xbf16>, vector<32x32xbf16>, vector<8x32xf32> -> vector<8x32xf32>
    %136 = arith.addf %70, %135 : vector<8x32xf32>
    %c0_81 = arith.constant 0 : index
    %c0_82 = arith.constant 0 : index
    %c0_83 = arith.constant 0 : index
    %137 = vector.load %arg18[%c0_81, %c0_82, %c0_83] : memref<1x1x32xf32, #tpu.memory_space<vmem>>, vector<1x1x32xf32>
    %138 = vector.shape_cast %137 : vector<1x1x32xf32> to vector<1x32xf32>
    %c0_84 = arith.constant 0 : index
    %c0_85 = arith.constant 0 : index
    %c0_86 = arith.constant 0 : index
    %139 = vector.load %arg19[%c0_84, %c0_85, %c0_86] : memref<1x1x32xf32, #tpu.memory_space<vmem>>, vector<1x1x32xf32>
    %140 = vector.shape_cast %139 : vector<1x1x32xf32> to vector<1x32xf32>
    %cst_87 = arith.constant dense<0.000000e+00> : vector<8xf32>
    %141 = vector.multi_reduction <add>, %136, %cst_87 [1] : vector<8x32xf32> to vector<8xf32>
    %142 = vector.shape_cast %141 : vector<8xf32> to vector<8x1xf32>
    %cst_88 = arith.constant 3.200000e+01 : f32
    %143 = vector.broadcast %cst_88 : f32 to vector<8x1xf32>
    %144 = arith.divf %142, %143 : vector<8x1xf32>
    %145 = vector.broadcast %144 : vector<8x1xf32> to vector<8x32xf32>
    %146 = arith.subf %136, %145 : vector<8x32xf32>
    %147 = arith.mulf %146, %146 : vector<8x32xf32>
    %cst_89 = arith.constant dense<0.000000e+00> : vector<8xf32>
    %148 = vector.multi_reduction <add>, %147, %cst_89 [1] : vector<8x32xf32> to vector<8xf32>
    %149 = vector.shape_cast %148 : vector<8xf32> to vector<8x1xf32>
    %cst_90 = arith.constant 3.200000e+01 : f32
    %150 = vector.broadcast %cst_90 : f32 to vector<8x1xf32>
    %151 = arith.divf %149, %150 : vector<8x1xf32>
    %152 = vector.broadcast %144 : vector<8x1xf32> to vector<8x32xf32>
    %153 = arith.subf %136, %152 : vector<8x32xf32>
    %cst_91 = arith.constant 9.99999997E-7 : f32
    %154 = vector.broadcast %cst_91 : f32 to vector<8x1xf32>
    %155 = arith.addf %151, %154 : vector<8x1xf32>
    %156 = math.rsqrt %155 : vector<8x1xf32>
    %157 = vector.broadcast %156 : vector<8x1xf32> to vector<8x32xf32>
    %158 = arith.mulf %153, %157 : vector<8x32xf32>
    %159 = vector.broadcast %138 : vector<1x32xf32> to vector<8x32xf32>
    %160 = arith.mulf %158, %159 : vector<8x32xf32>
    %161 = vector.broadcast %140 : vector<1x32xf32> to vector<8x32xf32>
    %162 = arith.addf %160, %161 : vector<8x32xf32>
    %163 = arith.truncf %162 : vector<8x32xf32> to vector<8x32xbf16>
    %c0_92 = arith.constant 0 : index
    %c0_93 = arith.constant 0 : index
    %c0_94 = arith.constant 0 : index
    %164 = vector.load %arg20[%c0_92, %c0_93, %c0_94] : memref<1x32x64xbf16, #tpu.memory_space<vmem>>, vector<1x32x64xbf16>
    %165 = vector.shape_cast %164 : vector<1x32x64xbf16> to vector<32x64xbf16>
    %cst_95 = arith.constant dense<0.000000e+00> : vector<8x64xf32>
    %166 = tpu.matmul %163, %165, %cst_95 {dimension_numbers = #tpu.dot_dimension_numbers<[1], [0], [0], [1], [0, 0, 1, 1], [], []>} : vector<8x32xbf16>, vector<32x64xbf16>, vector<8x64xf32> -> vector<8x64xf32>
    %c0_96 = arith.constant 0 : index
    %c0_97 = arith.constant 0 : index
    %c0_98 = arith.constant 0 : index
    %167 = vector.load %arg21[%c0_96, %c0_97, %c0_98] : memref<1x1x64xf32, #tpu.memory_space<vmem>>, vector<1x1x64xf32>
    %168 = vector.shape_cast %167 : vector<1x1x64xf32> to vector<1x64xf32>
    %169 = vector.broadcast %168 : vector<1x64xf32> to vector<8x64xf32>
    %170 = arith.addf %166, %169 : vector<8x64xf32>
    %cst_99 = arith.constant 0.000000e+00 : f32
    %171 = vector.broadcast %cst_99 : f32 to vector<8x64xf32>
    %172 = arith.maximumf %170, %171 : vector<8x64xf32>
    %173 = arith.truncf %172 : vector<8x64xf32> to vector<8x64xbf16>
    %c0_100 = arith.constant 0 : index
    %c0_101 = arith.constant 0 : index
    %c0_102 = arith.constant 0 : index
    %174 = vector.load %arg22[%c0_100, %c0_101, %c0_102] : memref<1x64x32xbf16, #tpu.memory_space<vmem>>, vector<1x64x32xbf16>
    %175 = vector.shape_cast %174 : vector<1x64x32xbf16> to vector<64x32xbf16>
    %cst_103 = arith.constant dense<0.000000e+00> : vector<8x32xf32>
    %176 = tpu.matmul %173, %175, %cst_103 {dimension_numbers = #tpu.dot_dimension_numbers<[1], [0], [0], [1], [0, 0, 1, 1], [], []>} : vector<8x64xbf16>, vector<64x32xbf16>, vector<8x32xf32> -> vector<8x32xf32>
    %c0_104 = arith.constant 0 : index
    %c0_105 = arith.constant 0 : index
    %c0_106 = arith.constant 0 : index
    %177 = vector.load %arg23[%c0_104, %c0_105, %c0_106] : memref<1x1x32xf32, #tpu.memory_space<vmem>>, vector<1x1x32xf32>
    %178 = vector.shape_cast %177 : vector<1x1x32xf32> to vector<1x32xf32>
    %179 = vector.broadcast %178 : vector<1x32xf32> to vector<8x32xf32>
    %180 = arith.addf %176, %179 : vector<8x32xf32>
    %181 = arith.addf %136, %180 : vector<8x32xf32>
    %c0_107 = arith.constant 0 : index
    %c0_108 = arith.constant 0 : index
    %182 = vector.load %arg27[%c0_107, %c0_108] : memref<8x32xf32, #tpu.memory_space<vmem>>, vector<8x32xf32>
    tpu.vector_store %arg27[%c0_107, %c0_108], %181 {strides = array<i32>} : memref<8x32xf32, #tpu.memory_space<vmem>>, vector<8x32xf32>,
    %c1_i32 = arith.constant 1 : i32
    %183 = arith.cmpi eq, %arg1, %c1_i32 : i32
    %184 = arith.extui %183 : i1 to i32
    %c0_i32_109 = arith.constant 0 : i32
    %185 = arith.cmpi ne, %184, %c0_i32_109 : i32
    scf.if %185 {
      %c0_110 = arith.constant 0 : index
      %c0_111 = arith.constant 0 : index
      %186 = vector.load %arg24[%c0_110, %c0_111] : memref<1x32xf32, #tpu.memory_space<vmem>>, vector<1x32xf32>
      %c0_112 = arith.constant 0 : index
      %c0_113 = arith.constant 0 : index
      %187 = vector.load %arg25[%c0_112, %c0_113] : memref<1x32xf32, #tpu.memory_space<vmem>>, vector<1x32xf32>
      %cst_114 = arith.constant dense<0.000000e+00> : vector<8xf32>
      %188 = vector.multi_reduction <add>, %181, %cst_114 [1] : vector<8x32xf32> to vector<8xf32>
      %189 = vector.shape_cast %188 : vector<8xf32> to vector<8x1xf32>
      %cst_115 = arith.constant 3.200000e+01 : f32
      %190 = vector.broadcast %cst_115 : f32 to vector<8x1xf32>
      %191 = arith.divf %189, %190 : vector<8x1xf32>
      %192 = vector.broadcast %191 : vector<8x1xf32> to vector<8x32xf32>
      %193 = arith.subf %181, %192 : vector<8x32xf32>
      %194 = arith.mulf %193, %193 : vector<8x32xf32>
      %cst_116 = arith.constant dense<0.000000e+00> : vector<8xf32>
      %195 = vector.multi_reduction <add>, %194, %cst_116 [1] : vector<8x32xf32> to vector<8xf32>
      %196 = vector.shape_cast %195 : vector<8xf32> to vector<8x1xf32>
      %cst_117 = arith.constant 3.200000e+01 : f32
      %197 = vector.broadcast %cst_117 : f32 to vector<8x1xf32>
      %198 = arith.divf %196, %197 : vector<8x1xf32>
      %199 = vector.broadcast %191 : vector<8x1xf32> to vector<8x32xf32>
      %200 = arith.subf %181, %199 : vector<8x32xf32>
      %cst_118 = arith.constant 9.99999997E-7 : f32
      %201 = vector.broadcast %cst_118 : f32 to vector<8x1xf32>
      %202 = arith.addf %198, %201 : vector<8x1xf32>
      %203 = math.rsqrt %202 : vector<8x1xf32>
      %204 = vector.broadcast %203 : vector<8x1xf32> to vector<8x32xf32>
      %205 = arith.mulf %200, %204 : vector<8x32xf32>
      %206 = vector.broadcast %186 : vector<1x32xf32> to vector<8x32xf32>
      %207 = arith.mulf %205, %206 : vector<8x32xf32>
      %208 = vector.broadcast %187 : vector<1x32xf32> to vector<8x32xf32>
      %209 = arith.addf %207, %208 : vector<8x32xf32>
      %c0_119 = arith.constant 0 : index
      %c0_120 = arith.constant 0 : index
      %c0_121 = arith.constant 0 : index
      %210 = vector.load %arg26[%c0_119, %c0_120, %c0_121] : memref<1x8x32xf32, #tpu.memory_space<vmem>>, vector<1x8x32xf32>
      %211 = vector.shape_cast %210 : vector<1x8x32xf32> to vector<8x32xf32>
      %212 = vector.shape_cast %209 : vector<8x32xf32> to vector<1x8x32xf32>
      tpu.vector_store %arg26[%c0_119, %c0_120, %c0_121], %212 {strides = array<i32>} : memref<1x8x32xf32, #tpu.memory_space<vmem>>, vector<1x8x32xf32>,
    } else {
    }
    return
  }
  func.func @transform_0(%arg0: i32, %arg1: i32) -> (i32, i32, i32) {
    %c0_i32 = arith.constant 0 : i32
    %c0_i32_0 = arith.constant 0 : i32
    %c0_i32_1 = arith.constant 0 : i32
    return %arg0, %c0_i32, %c0_i32_0 : i32, i32, i32
  }
  func.func @transform_1(%arg0: i32, %arg1: i32) -> (i32, i32, i32) {
    %c0_i32 = arith.constant 0 : i32
    %c0_i32_0 = arith.constant 0 : i32
    %c0_i32_1 = arith.constant 0 : i32
    return %arg0, %c0_i32, %c0_i32_0 : i32, i32, i32
  }
  func.func @transform_2(%arg0: i32, %arg1: i32) -> (i32, i32, i32) {
    %c0_i32 = arith.constant 0 : i32
    %c0_i32_0 = arith.constant 0 : i32
    %c0_i32_1 = arith.constant 0 : i32
    return %arg0, %c0_i32, %c0_i32_0 : i32, i32, i32
  }
  func.func @transform_3(%arg0: i32, %arg1: i32) -> (i32, i32, i32) {
    %c0_i32 = arith.constant 0 : i32
    %c0_i32_0 = arith.constant 0 : i32
    %c0_i32_1 = arith.constant 0 : i32
    return %arg0, %c0_i32, %c0_i32_0 : i32, i32, i32
  }
  func.func @transform_4(%arg0: i32, %arg1: i32) -> (i32, i32, i32) {
    %c0_i32 = arith.constant 0 : i32
    %c0_i32_0 = arith.constant 0 : i32
    %c0_i32_1 = arith.constant 0 : i32
    return %arg1, %c0_i32, %c0_i32_0 : i32, i32, i32
  }
  func.func @transform_5(%arg0: i32, %arg1: i32) -> (i32, i32, i32) {
    %c0_i32 = arith.constant 0 : i32
    %c0_i32_0 = arith.constant 0 : i32
    %c0_i32_1 = arith.constant 0 : i32
    return %arg1, %c0_i32, %c0_i32_0 : i32, i32, i32
  }
  func.func @transform_6(%arg0: i32, %arg1: i32) -> (i32, i32, i32, i32) {
    %c0_i32 = arith.constant 0 : i32
    %c0_i32_0 = arith.constant 0 : i32
    %c0_i32_1 = arith.constant 0 : i32
    %c0_i32_2 = arith.constant 0 : i32
    return %arg1, %c0_i32, %c0_i32_0, %c0_i32_1 : i32, i32, i32, i32
  }
  func.func @transform_7(%arg0: i32, %arg1: i32) -> (i32, i32, i32, i32) {
    %c0_i32 = arith.constant 0 : i32
    %c0_i32_0 = arith.constant 0 : i32
    %c0_i32_1 = arith.constant 0 : i32
    %c0_i32_2 = arith.constant 0 : i32
    return %arg1, %c0_i32, %c0_i32_0, %c0_i32_1 : i32, i32, i32, i32
  }
  func.func @transform_8(%arg0: i32, %arg1: i32) -> (i32, i32, i32, i32) {
    %c0_i32 = arith.constant 0 : i32
    %c0_i32_0 = arith.constant 0 : i32
    %c0_i32_1 = arith.constant 0 : i32
    %c0_i32_2 = arith.constant 0 : i32
    return %arg1, %c0_i32, %c0_i32_0, %c0_i32_1 : i32, i32, i32, i32
  }
  func.func @transform_9(%arg0: i32, %arg1: i32) -> (i32, i32, i32, i32) {
    %c0_i32 = arith.constant 0 : i32
    %c0_i32_0 = arith.constant 0 : i32
    %c0_i32_1 = arith.constant 0 : i32
    %c0_i32_2 = arith.constant 0 : i32
    return %arg1, %c0_i32, %c0_i32_0, %c0_i32_1 : i32, i32, i32, i32
  }
  func.func @transform_10(%arg0: i32, %arg1: i32) -> (i32, i32, i32) {
    %c0_i32 = arith.constant 0 : i32
    %c0_i32_0 = arith.constant 0 : i32
    %c0_i32_1 = arith.constant 0 : i32
    return %arg1, %c0_i32, %c0_i32_0 : i32, i32, i32
  }
  func.func @transform_11(%arg0: i32, %arg1: i32) -> (i32, i32, i32) {
    %c0_i32 = arith.constant 0 : i32
    %c0_i32_0 = arith.constant 0 : i32
    %c0_i32_1 = arith.constant 0 : i32
    return %arg1, %c0_i32, %c0_i32_0 : i32, i32, i32
  }
  func.func @transform_12(%arg0: i32, %arg1: i32) -> (i32, i32, i32, i32) {
    %c0_i32 = arith.constant 0 : i32
    %c0_i32_0 = arith.constant 0 : i32
    %c0_i32_1 = arith.constant 0 : i32
    %c0_i32_2 = arith.constant 0 : i32
    return %arg1, %c0_i32, %c0_i32_0, %c0_i32_1 : i32, i32, i32, i32
  }
  func.func @transform_13(%arg0: i32, %arg1: i32) -> (i32, i32, i32, i32) {
    %c0_i32 = arith.constant 0 : i32
    %c0_i32_0 = arith.constant 0 : i32
    %c0_i32_1 = arith.constant 0 : i32
    %c0_i32_2 = arith.constant 0 : i32
    return %arg1, %c0_i32, %c0_i32_0, %c0_i32_1 : i32, i32, i32, i32
  }
  func.func @transform_14(%arg0: i32, %arg1: i32) -> (i32, i32, i32, i32) {
    %c0_i32 = arith.constant 0 : i32
    %c0_i32_0 = arith.constant 0 : i32
    %c0_i32_1 = arith.constant 0 : i32
    %c0_i32_2 = arith.constant 0 : i32
    return %arg1, %c0_i32, %c0_i32_0, %c0_i32_1 : i32, i32, i32, i32
  }
  func.func @transform_15(%arg0: i32, %arg1: i32) -> (i32, i32, i32, i32) {
    %c0_i32 = arith.constant 0 : i32
    %c0_i32_0 = arith.constant 0 : i32
    %c0_i32_1 = arith.constant 0 : i32
    %c0_i32_2 = arith.constant 0 : i32
    return %arg1, %c0_i32, %c0_i32_0, %c0_i32_1 : i32, i32, i32, i32
  }
  func.func @transform_16(%arg0: i32, %arg1: i32) -> (i32, i32, i32) {
    %c0_i32 = arith.constant 0 : i32
    %c0_i32_0 = arith.constant 0 : i32
    %c0_i32_1 = arith.constant 0 : i32
    return %arg1, %c0_i32, %c0_i32_0 : i32, i32, i32
  }
  func.func @transform_17(%arg0: i32, %arg1: i32) -> (i32, i32, i32) {
    %c0_i32 = arith.constant 0 : i32
    %c0_i32_0 = arith.constant 0 : i32
    %c0_i32_1 = arith.constant 0 : i32
    return %arg1, %c0_i32, %c0_i32_0 : i32, i32, i32
  }
  func.func @transform_18(%arg0: i32, %arg1: i32) -> (i32, i32, i32) {
    %c0_i32 = arith.constant 0 : i32
    %c0_i32_0 = arith.constant 0 : i32
    %c0_i32_1 = arith.constant 0 : i32
    return %arg1, %c0_i32, %c0_i32_0 : i32, i32, i32
  }
  func.func @transform_19(%arg0: i32, %arg1: i32) -> (i32, i32, i32) {
    %c0_i32 = arith.constant 0 : i32
    %c0_i32_0 = arith.constant 0 : i32
    %c0_i32_1 = arith.constant 0 : i32
    return %arg1, %c0_i32, %c0_i32_0 : i32, i32, i32
  }
  func.func @transform_20(%arg0: i32, %arg1: i32) -> (i32, i32, i32) {
    %c0_i32 = arith.constant 0 : i32
    %c0_i32_0 = arith.constant 0 : i32
    %c0_i32_1 = arith.constant 0 : i32
    return %arg1, %c0_i32, %c0_i32_0 : i32, i32, i32
  }
  func.func @transform_21(%arg0: i32, %arg1: i32) -> (i32, i32, i32) {
    %c0_i32 = arith.constant 0 : i32
    %c0_i32_0 = arith.constant 0 : i32
    %c0_i32_1 = arith.constant 0 : i32
    return %arg1, %c0_i32, %c0_i32_0 : i32, i32, i32
  }
  func.func @transform_22(%arg0: i32, %arg1: i32) -> (i32, i32) {
    %c0_i32 = arith.constant 0 : i32
    %c0_i32_0 = arith.constant 0 : i32
    %c0_i32_1 = arith.constant 0 : i32
    return %c0_i32, %c0_i32_0 : i32, i32
  }
  func.func @transform_23(%arg0: i32, %arg1: i32) -> (i32, i32) {
    %c0_i32 = arith.constant 0 : i32
    %c0_i32_0 = arith.constant 0 : i32
    %c0_i32_1 = arith.constant 0 : i32
    return %c0_i32, %c0_i32_0 : i32, i32
  }
  func.func @transform_24(%arg0: i32, %arg1: i32) -> (i32, i32, i32) {
    %c0_i32 = arith.constant 0 : i32
    %c0_i32_0 = arith.constant 0 : i32
    %c0_i32_1 = arith.constant 0 : i32
    return %arg0, %c0_i32, %c0_i32_0 : i32, i32, i32
  }
}

</mosaic_0001>

<bundles_post_ra>
// kernel: decoder_forward.1
= control target key start
LH: loop header
LB: loop body
LE: loop exit
PB: predicated region body
PF: predicated region fallthrough
CT: control target
= control target key end

     0   :  { %s3537_s0 = inlined_call_operand.vmem [shape: f32[2,8,32], index: 0, kind: input, shape index: {}]   ;;  %s3538_s1 = inlined_call_operand.vmem [shape: f32[2,8,32], index: 1, kind: input, shape index: {}]   ;;  %s3539_s2 = inlined_call_operand.vmem [shape: f32[2,8,8], index: 2, kind: input, shape index: {}]   ;;  %s3540_s3 = inlined_call_operand.vmem [shape: f32[2,8,8], index: 3, kind: input, shape index: {}]   ;;  %s3541_s4 = inlined_call_operand.vmem [shape: f32[2,1,32], index: 4, kind: input, shape index: {}]   ;;  %s3542_s5 = inlined_call_operand.vmem [shape: f32[2,1,32], index: 5, kind: input, shape index: {}]   ;;  %s3543_s6 = inlined_call_operand.vmem [shape: bf16[2,4,32,8], index: 6, kind: input, shape index: {}]   ;;  %s3544_s7 = inlined_call_operand.vmem [shape: bf16[2,4,32,8], index: 7, kind: input, shape index: {}]   ;;  %s3545_s8 = inlined_call_operand.vmem [shape: bf16[2,4,32,8], index: 8, kind: input, shape index: {}]   ;;  %s3546_s9 = inlined_call_operand.vmem [shape: bf16[2,4,8,32], index: 9, kind: input, shape index: {}]   ;;  %s3547_s10 = inlined_call_operand.vmem [shape: f32[2,1,32], index: 10, kind: input, shape index: {}]   ;;  %s3548_s11 = inlined_call_operand.vmem [shape: f32[2,1,32], index: 11, kind: input, shape index: {}]   ;;  %s3549_s12 = inlined_call_operand.vmem [shape: bf16[2,1,32,32], index: 12, kind: input, shape index: {}]   ;;  %s3550_s13 = inlined_call_operand.vmem [shape: bf16[2,1,32,32], index: 13, kind: input, shape index: {}]   ;;  %s3551_s14 = inlined_call_operand.vmem [shape: bf16[2,1,32,32], index: 14, kind: input, shape index: {}]   ;;  %s3552_s15 = inlined_call_operand.vmem [shape: bf16[2,1,32,32], index: 15, kind: input, shape index: {}]   ;;  %s3553_s16 = inlined_call_operand.vmem [shape: f32[2,1,32], index: 16, kind: input, shape index: {}]   ;;  %s3554_s17 = inlined_call_operand.vmem [shape: f32[2,1,32], index: 17, kind: input, shape index: {}]   ;;  %s3555_s18 = inlined_call_operand.vmem [shape: bf16[2,32,64], index: 18, kind: input, shape index: {}]   ;;  %s3556_s19 = inlined_call_operand.vmem [shape: f32[2,1,64], index: 19, kind: input, shape index: {}]   ;;  %s3557_s20 = inlined_call_operand.vmem [shape: bf16[2,64,32], index: 20, kind: input, shape index: {}]   ;;  %s3558_s21 = inlined_call_operand.vmem [shape: f32[2,1,32], index: 21, kind: input, shape index: {}]   ;;  %s3559_s22 = inlined_call_operand.vmem [shape: f32[1,32], index: 22, kind: input, shape index: {}]   ;;  %s3560_s23 = inlined_call_operand.vmem [shape: f32[1,32], index: 23, kind: input, shape index: {}]   ;;  %s3561_s24 = inlined_call_operand.hbm [shape: f32[2,8,32], index: 24, kind: output, shape index: {}]  }
   0x1   :  { %3580 = sst [smem:[#allocation22_spill]] %s3537_s0 }
   0x2   :  { %3581 = sst [smem:[#allocation23_spill]] %s3538_s1 }
   0x3   :  { %3582 = sst [smem:[#allocation24_spill]] %s3539_s2 }
   0x4   :  { %3583 = sst [smem:[#allocation25_spill]] %s3540_s3 }
   0x5   :  { %3584 = sst [smem:[#allocation26_spill]] %s3541_s4 }
   0x6   :  { %3585 = sst [smem:[#allocation27_spill]] %s3542_s5 }
   0x7   :  { %3586 = sst [smem:[#allocation28_spill]] %s3543_s6 }
   0x8   :  { %3587 = sst [smem:[#allocation29_spill]] %s3544_s7 }
   0x9   :  { %3588 = sst [smem:[#allocation30_spill]] %s3545_s8 }
   0xa   :  { %3589 = sst [smem:[#allocation31_spill]] %s3546_s9 }
   0xb   :  { %3590 = sst [smem:[#allocation32_spill]] %s3547_s10 }
   0xc   :  { %3591 = sst [smem:[#allocation33_spill]] %s3548_s11 }
   0xd   :  { %3592 = sst [smem:[#allocation34_spill]] %s3549_s12 }
   0xe   :  { %3593 = sst [smem:[#allocation35_spill]] %s3550_s13 }
   0xf   :  { %3594 = sst [smem:[#allocation36_spill]] %s3551_s14 }
  0x10   :  { %3595 = sst [smem:[#allocation37_spill]] %s3552_s15 }
  0x11   :  { %3596 = sst [smem:[#allocation38_spill]] %s3553_s16 }
  0x12   :  { %3597 = sst [smem:[#allocation39_spill]] %s3554_s17 }
  0x13   :  { %3598 = sst [smem:[#allocation40_spill]] %s3555_s18 }
  0x14   :  { %3599 = sst [smem:[#allocation41_spill]] %s3556_s19 }
  0x15   :  { %3600 = sst [smem:[#allocation42_spill]] %s3557_s20 }
  0x16   :  { %3601 = sst [smem:[#allocation43_spill]] %s3558_s21 }
  0x17   :  { %3602 = sst [smem:[#allocation44_spill]] %s3559_s22 }
  0x18   :  { %3603 = sst [smem:[#allocation45_spill]] %s3560_s23 }
  0x19   :  { %3604 = sst [smem:[#allocation46_spill]] %s3561_s24 }
  0x1a   :  { %29 = vsyncpa [#allocation4], 0 }
  0x1b   :  { %31 = vsyncpa [#allocation4 + $0x1], 0  ;;  %s3111_s5 = smov 0   ;;  %s3113_s26 = smov 0  }
  0x1c   :  { %s3115_s27 = smov 0   ;;  %s3117_s28 = smov 0  }
  0x1d   :  { %s3119_s6 = smov 0   ;;  %s3121_s2 = smov 0  }
  0x1e   :  { %s3123_s29 = smov 0   ;;  %s3125_s0 = smov 0  }
  0x1f LB: > { %3605 = sst [smem:[#allocation6_spill]] %s2955_s5  ;;  %s2509_s7 = sadd.s32 4294967295, %s2983_s0   ;;  %s2983_s0 = sphi %s3125_s0, %s37_s0   ;;  %s2979_s29 = sphi %s3123_s29, %s3685_s29   ;;  %s2975_s2 = sphi %s3121_s2, %s3684_s2   ;;  %s2971_s6 = sphi %s3119_s6, %s3683_s6   ;;  %s2967_s28 = sphi %s3117_s28, %s3682_s28   ;;  %s2963_s27 = sphi %s3115_s27, %s3681_s27   ;;  %s2959_s26 = sphi %s3113_s26, %s3680_s26   ;;  %s2955_s5 = sphi %s3111_s5, %s3679_s5  }
  0x20   : > { %3606 = sst [smem:[#allocation7_spill]] %s2959_s26  ;;  %s2510_s30 = sadd.s32 4294967294, %s2983_s0  }
  0x21   : > { %3607 = sst [smem:[#allocation8_spill]] %s2963_s27  ;;  %s46_s3 = sadd.s32 1, %s2975_s2 }
  0x22   : > { %3608 = sst [smem:[#allocation9_spill]] %s2967_s28  ;;  %p47_p0 = scmp.ge.s32.totalorder %s46_s3, 2 }
  0x23   : > { %3609 = sst [smem:[#allocation10_spill]] %s2971_s6  ;;  %s49_s25 = sadd.s32 1, %s2979_s29 }
  0x24   : > { %3610 = sst [smem:[#allocation11_spill]] %s2975_s2  ;;  %p680_p1 = scmp.ne.s32.totalorder %s2963_s27, %s2959_s26 }
  0x25   : > { %3611 = sst [smem:[#allocation12_spill]] %s2979_s29  ;;  %p681_p2 = scmp.eq.s32.totalorder %s2509_s7, 3 }
  0x26   : > { %3612 = sst [smem:[#allocation13_spill]] %s2983_s0  ;;  %s3687_s3 = smov (%p47_p0, %s46_s3), 0 }
  0x27   : > { %3613 = sst [smem:[#allocation14_spill]] %s3687_s3  ;;  %s3689_s25 = smov (!%p47_p0, %s49_s25), %s2979_s29 }
  0x28   : > { %p3160_p3 = por %p681_p2, %p680_p1  ;;  %p686_p4 = scmp.ne.s32.totalorder %s2959_s26, %s2955_s5 }
  0x29   : > { %p51_p5 = scmp.ge.s32.totalorder %s3689_s25, 2  ;;  %p687_p6 = scmp.eq.s32.totalorder %s2510_s30, 3 }
  0x2a   : > { %s3614_s8 = scalar_select %p3160_p3, 1, 0 }
  0x2b   : > { %p2513_p7 = scmp.ge.s32.totalorder %s2983_s0, 1  ;;  %p867_p8 = scmp.lt.s32.totalorder %s2983_s0, 5 }
  0x2c   : > { %3615 = sst [smem:[#allocation15_spill]] %s3614_s8  ;;  %s3691_s25 = smov (%p51_p5, %s3689_s25), 0 }
  0x2d   : > { %3616 = sst [smem:[#allocation16_spill]] %s3691_s25  ;;  %p3170_p9 = por %p687_p6, %p686_p4 }
  0x2e   : > { %p868_p10 = pnand %p2513_p7, %p867_p8  ;;  %s667_s1 = ssub.s32 %s2979_s29, %s3691_s25 }
  0x2f   : > { %s3617_s4 = scalar_select %p3170_p9, 1, 0 }
  0x30   : > { %s670_s7 = sadd.s32 1, %s2963_s27  ;;  %p668_p11 = scmp.eq.s32.totalorder %s667_s1, 0 }
  0x31   : > { %3618 = sst [smem:[#allocation17_spill]] %s3617_s4  ;;  %871 = sbr.rel (%p868_p10) target bundleno = 3080 (0xc08), region = 116 }
  0x32   : > { %s3178_s3 = scalar_select %p668_p11, %s2963_s27, %s670_s7  }
  0x34   : > { %3619 = sst [smem:[#allocation18_spill]] %s3178_s3 }
  0x36   : > { %s3567_s30 = sand.u32 1, %s2959_s26   ;;  %p1018_p12 = scmp.lt.s32.totalorder %s2971_s6, 1 }
  0x37   : > { %s3184_s2 = sshll.u32 %s3567_s30, 3  ;;  %p1034_p13 = scmp.lt.s32.totalorder %s2967_s28, 1 }
  0x38   : > { %s1019_s4 = scalar_select %p1018_p12, %s2971_s6, 1 }
  0x39   : > { %s3189_s5 = scalar_select %p1034_p13, %s2967_s28, 1 }
  0x3a   : > { %s3191_s1 = sshll.u32 %s1019_s4, 3  ;;  %s3620_s29 = sld [smem:[#allocation22_spill]] }
  0x3b   : > { %s2729_s27 = sshll.u32 %s3189_s5, 6  ;;  %s2732_s0 = sshll.u32 %s3189_s5, 4 }
  0x3c   : > { %s3626_s3 = sld [smem:[#allocation28_spill]]  ;;  %s2738_s26 = sshll.u32 %s3189_s5, 5 }
  0x3d   : > { %s3627_s4 = sld [smem:[#allocation29_spill]] }
  0x3e   : > { %s3628_s20 = sld [smem:[#allocation30_spill]] }
  0x3f   : > { %s3629_s9 = sld [smem:[#allocation31_spill]] }
  0x40   : > { %s1021_s30 = scalar_lea.vmem %s3620_s29, %s3191_s1  ;;  %s3632_s12 = sld [smem:[#allocation34_spill]] }
  0x41   : > { %s3634_s13 = sld [smem:[#allocation35_spill]] }
  0x42   : > { %s3222_s22 = scalar_lea.vmem %s3626_s3, %s2729_s27  ;;  %s3635_s14 = sld [smem:[#allocation36_spill]] }
  0x43   : > { %s3227_s19 = scalar_lea.vmem %s3627_s4, %s2729_s27  ;;  %s3637_s15 = sld [smem:[#allocation37_spill]] }
  0x44   : > { %s3232_s17 = scalar_lea.vmem %s3628_s20, %s2729_s27  ;;  %s3641_s11 = sld [smem:[#allocation40_spill]] }
  0x45   : > { %s3237_s24 = scalar_lea.vmem %s3629_s9, %s2732_s0  ;;  %s3644_s8 = sld [smem:[#allocation42_spill]] }
  0x46   : > { %s3250_s21 = scalar_lea.vmem %s3632_s12, %s2732_s0  ;;  %s3640_s12 = sld [smem:[#allocation39_spill]] }
  0x47   : > { %3633 = sst [smem:[#allocation19_spill]] %s3250_s21  ;;  %s3255_s25 = scalar_lea.vmem %s3634_s13, %s2732_s0 }
  0x48   : > { %s3260_s7 = scalar_lea.vmem %s3635_s14, %s2732_s0  ;;  %s3642_s14 = sld [smem:[#allocation41_spill]] }
  0x49   : > { %3636 = sst [smem:[#allocation20_spill]] %s3260_s7  ;;  %s3265_s16 = scalar_lea.vmem %s3637_s15, %s2732_s0 }
  0x4a   : > { %3638 = sst [smem:[#allocation21_spill]] %s3265_s16  ;;  %s3278_s10 = scalar_lea.vmem %s3641_s11, %s2732_s0 }
  0x4b   : > { %s3643_s16 = sld [smem:[#allocation43_spill]]  ;;  %s3292_s4 = scalar_lea.vmem %s3644_s8, %s2738_s26 }
  0x4c   : > { %s1091_s20 = scalar_lea.vmem %s3640_s12, %s3189_s5  ;;  %s1017_s9 = scalar_lea.vmem [#allocation3], %s3184_s2 }
  0x4d   : > { %s3645_s12 = sld [smem:[#allocation9_spill]] }
  0x4e   : > { %s1099_s7 = scalar_lea.vmem %s3642_s14, %s3189_s5 }
  0x51   : > { %s1107_s21 = scalar_lea.vmem %s3643_s16, %s3189_s5 }
  0x53   : > { %p2539_p0 = scmp.ne.s32.totalorder %s3645_s12, 0 }
  0x55   : > { %1112 = sbr.rel (%p2539_p0) target bundleno = 92 (0x5c), region = 120 }
  0x5a   : > { %v1113_v0 = vld [vmem:[%s1021_s30] sm:$0xff]  ;;  %vm1114_vm0 = vcmask 261120  }
  0x5b   : > { %1115 = vst.msk [vmem:[#allocation2] sm:$0xff] %vm1114_vm0, %v1113_v0 }
  0x5c PF: > { %vm1120_vm1 = vcmask 261120   ;;  %v2985_v3 = vmov 32.0   ;;  %v2740_v15 = vld [vmem:[%s3222_s22 + $0x8] sm:$0xff]  ;;  %v2742_v16 = vld [vmem:[%s3222_s22 + $0x18] sm:$0xff]  ;;  %v2739_v19 = vld [vmem:[%s3222_s22] sm:$0xff]  ;;  %s3646_s14 = sld [smem:[#allocation26_spill]] }
  0x5d   : > { %2857 = vrcp.f32 %v2985_v3  ;;  %v2744_v17 = vld [vmem:[%s3222_s22 + $0x28] sm:$0xff]  ;;  %v2746_v18 = vld [vmem:[%s3222_s22 + $0x38] sm:$0xff]  ;;  %1233 = vmatpush.bf16.msra.mxu0 %v2740_v15  ;;  %1258 = vmatpush.bf16.msra.mxu1 %v2742_v16  ;;  %v2741_v20 = vld [vmem:[%s3222_s22 + $0x10] sm:$0xff]  ;;  %vm1523_vm6 = vcmask 64512   ;;  %vm1655_vm7 = vcmask 1043456   ;;  %s3650_s16 = sld [smem:[#allocation24_spill]] }
  0x5e   : > { %1283 = vmatpush.bf16.msra.mxu2 %v2744_v17  ;;  %1308 = vmatpush.bf16.msra.mxu3 %v2746_v18  ;;  %v2743_v21 = vld [vmem:[%s3222_s22 + $0x20] sm:$0xff]  ;;  %v2745_v22 = vld [vmem:[%s3222_s22 + $0x30] sm:$0xff]  ;;  %v2748_v24 = vld [vmem:[%s3227_s19 + $0x8] sm:$0xff]  ;;  %s3648_s22 = sld [smem:[#allocation27_spill]]  ;;  %vm2139_vm14 = vcmask 523264  }
  0x5f   : > { %v2750_v25 = vld [vmem:[%s3227_s19 + $0x18] sm:$0xff]  ;;  %v2752_v26 = vld [vmem:[%s3227_s19 + $0x28] sm:$0xff]  ;;  %v2747_v29 = vld [vmem:[%s3227_s19] sm:$0xff]  ;;  %s3653_s26 = sld [smem:[#allocation23_spill]] }
  0x60   : > { %v2754_v28 = vld [vmem:[%s3227_s19 + $0x38] sm:$0xff]  ;;  %v2749_v30 = vld [vmem:[%s3227_s19 + $0x10] sm:$0xff]  ;;  %v2751_v32 = vld [vmem:[%s3227_s19 + $0x20] sm:$0xff]  ;;  %s3655_s23 = sld [smem:[#allocation32_spill]] }
  0x61   : > { %1234 = vmatpush.bf16.msra.mxu0 %v2739_v19  ;;  %1259 = vmatpush.bf16.msra.mxu1 %v2741_v20  ;;  %v2753_v33 = vld [vmem:[%s3227_s19 + $0x30] sm:$0xff]  ;;  %v2756_v47 = vld [vmem:[%s3232_s17 + $0x8] sm:$0xff]  ;;  %v2758_v48 = vld [vmem:[%s3232_s17 + $0x18] sm:$0xff]  ;;  %s3657_s12 = sld [smem:[#allocation20_spill]] }
  0x62   : > { %v3296_v1 = vld [vmem:[#allocation2] sm:$0xff]  ;;  %1284 = vmatpush.bf16.msra.mxu2 %v2743_v21  ;;  %1309 = vmatpush.bf16.msra.mxu3 %v2745_v22  ;;  %s3647_s15 = scalar_lea.vmem %s3646_s14, %s3189_s5  ;;  %v2760_v49 = vld [vmem:[%s3232_s17 + $0x28] sm:$0xff]  ;;  %v2762_v50 = vld [vmem:[%s3232_s17 + $0x38] sm:$0xff]  ;;  %s3658_s14 = sld [smem:[#allocation33_spill]] }
  0x63   : > { %v1121_v2 = vsel %vm1120_vm1, %v3296_v1, 0.0  ;;  %v2858_v4 = vpop.eup %2857  ;;  %v2849_v40 = vld [vmem:[%s3647_s15] ss:$0 sm:$0xff]  ;;  %v2757_v52 = vld [vmem:[%s3232_s17 + $0x10] sm:$0xff]  ;;  %s3651_s27 = scalar_lea.vmem %s3650_s16, %s3191_s1  ;;  %s3663_s3 = sld [smem:[#allocation38_spill]] }
  0x64   : > { %1122 = vadd.xlane.f32.xlu0 %v1121_v2  ;;  %v1125_v5 = vmul.f32 32.0, %v2858_v4  ;;  %vm1129_vm2 = vweird.f32 %v2858_v4  ;;  %s3649_s19 = scalar_lea.vmem %s3648_s22, %s3189_s5  ;;  %v2755_v51 = vld [vmem:[%s3232_s17] sm:$0xff]  ;;  %v2761_v54 = vld [vmem:[%s3232_s17 + $0x30] sm:$0xff]  ;;  %s3660_s22 = sld [smem:[#allocation25_spill]] }
  0x65   : > { %1333 = vmatpush.bf16.msrb.mxu0 %v2748_v24  ;;  %1358 = vmatpush.bf16.msrb.mxu1 %v2750_v25  ;;  %v2850_v42 = vld [vmem:[%s3649_s19] ss:$0 sm:$0xff]  ;;  %s3654_s6 = scalar_lea.vmem %s3653_s26, %s3191_s1 }
  0x66   : > { %v1126_v6 = vsub.f32 1.0, %v1125_v5  ;;  %1383 = vmatpush.bf16.msrb.mxu2 %v2752_v26  ;;  %1408 = vmatpush.bf16.msrb.mxu3 %v2754_v28  ;;  %v2759_v53 = vld [vmem:[%s3232_s17 + $0x20] sm:$0xff]  ;;  %s3656_s8 = scalar_lea.vmem %s3655_s23, %s3189_s5  ;;  %s3662_s17 = sld [smem:[#allocation21_spill]] }
  0x68   : > { %v1127_v7 = vmul.f32 %v2858_v4, %v1126_v6  ;;  %s3659_s15 = scalar_lea.vmem %s3658_s14, %s3189_s5 }
  0x69   : > { %1334 = vmatpush.bf16.msrb.mxu0 %v2747_v29  ;;  %1359 = vmatpush.bf16.msrb.mxu1 %v2749_v30  ;;  %s3664_s16 = scalar_lea.vmem %s3663_s3, %s3189_s5 }
  0x6a   : > { %v1128_v8 = vadd.f32 %v2858_v4, %v1127_v7  ;;  %1384 = vmatpush.bf16.msrb.mxu2 %v2751_v32  ;;  %1409 = vmatpush.bf16.msrb.mxu3 %v2753_v33  ;;  %s3661_s19 = scalar_lea.vmem %s3660_s22, %s3191_s1 }
  0x6c   : > { %v3300_v9 = vsel %vm1129_vm2, %v2858_v4, %v1128_v8 }
  0xd7   : > { %v1123_v10 = vpop.xlane.xlu0 %1122 }
  0xd8   : > { %v1131_v11 = vmul.f32 %v3300_v9, %v1123_v10 }
  0xda   : > { %v1132_v12 = vsub.f32 %v3296_v1, %v1131_v11 }
  0xdc   : > { %v1133_v13 = vmul.f32 %v1132_v12, %v1132_v12 }
  0xde   : > { %v1134_v14 = vsel %vm1120_vm1, %v1133_v13, 0.0 }
  0xdf   : > { %1135 = vadd.xlane.f32.xlu0 %v1134_v14 }
 0x152   : > { %v1136_v23 = vpop.xlane.xlu0 %1135 }
 0x153   : > { %v1137_v27 = vmul.f32 %v1136_v23, %v3300_v9 }
 0x155   : > { %v1138_v31 = vadd.f32 1e-06, %v1137_v27 }
 0x157   : > { %2859 = vrsqrt.f32 %v1138_v31  ;;  %vm1145_vm4 = vweird.f32 %v1138_v31 }
 0x15d   : > { %v2860_v34 = vpop.eup %2859 }
 0x15e   : > { %v1140_v35 = vmul.f32 %v2860_v34, %v1138_v31  ;;  %vm1146_vm3 = vweird.f32 %v2860_v34 }
 0x15f   : > { %vm1147_vm5 = vmor %vm1145_vm4, %vm1146_vm3 }
 0x160   : > { %v1141_v36 = vmul.f32 %v2860_v34, %v1140_v35 }
 0x162   : > { %v1142_v37 = vmul.f32 0.5, %v1141_v36 }
 0x164   : > { %v1143_v38 = vsub.f32 1.5, %v1142_v37  ;;  %v1158_v37 = vld [vmem:[%s3651_s27] sm:$0xff] }
 0x166   : > { %v1144_v39 = vmul.f32 %v2860_v34, %v1143_v38 }
 0x168   : > { %v1148_v41 = vsel %vm1147_vm5, %v2860_v34, %v1144_v39 }
 0x169   : > { %v1149_v43 = vmul.f32 %v1148_v41, %v1132_v12 }
 0x16b   : > { %v1153_v44 = vmul.f32 %v2849_v40, %v1149_v43 }
 0x16d   : > { %v1157_v45 = vadd.f32 %v2850_v42, %v1153_v44 }
 0x16f   : > { %v1211_v46 = vpack.c.bf16 %v1157_v45, %v1157_v45 }
 0x171   : > { %2548 = vmatmul.msk.bf16.vlgmr.msra.gmra.mxu0 %vm1120_vm1, %v1211_v46  ;;  %2557 = vmatmul.msk.bf16.vlgmr.msra.gmra.mxu1 %vm1120_vm1, %v1211_v46 }
 0x172   : > { %2566 = vmatmul.msk.bf16.vlgmr.msra.gmra.mxu2 %vm1120_vm1, %v1211_v46  ;;  %2575 = vmatmul.msk.bf16.vlgmr.msra.gmra.mxu3 %vm1120_vm1, %v1211_v46 }
 0x173   : > { %1433 = vmatpush.bf16.msra.mxu0 %v2756_v47  ;;  %1458 = vmatpush.bf16.msra.mxu1 %v2758_v48 }
 0x174   : > { %1483 = vmatpush.bf16.msra.mxu2 %v2760_v49  ;;  %1508 = vmatpush.bf16.msra.mxu3 %v2762_v50 }
 0x177   : > { %1434 = vmatpush.bf16.msra.mxu0 %v2755_v51  ;;  %1459 = vmatpush.bf16.msra.mxu1 %v2757_v52 }
 0x178   : > { %1484 = vmatpush.bf16.msra.mxu2 %v2759_v53  ;;  %1509 = vmatpush.bf16.msra.mxu3 %v2761_v54 }
 0x181   : > { %2584 = vmatmul.msk.bf16.vlgmr.msrb.gmra.mxu0 %vm1120_vm1, %v1211_v46  ;;  %2593 = vmatmul.msk.bf16.vlgmr.msrb.gmra.mxu1 %vm1120_vm1, %v1211_v46 }
 0x182   : > { %2602 = vmatmul.msk.bf16.vlgmr.msrb.gmra.mxu2 %vm1120_vm1, %v1211_v46  ;;  %2611 = vmatmul.msk.bf16.vlgmr.msrb.gmra.mxu3 %vm1120_vm1, %v1211_v46 }
 0x191   : > { %2620 = vmatmul.msk.bf16.vlgmr.msra.gmra.mxu0 %vm1120_vm1, %v1211_v46  ;;  %2629 = vmatmul.msk.bf16.vlgmr.msra.gmra.mxu1 %vm1120_vm1, %v1211_v46 }
 0x192   : > { %2638 = vmatmul.msk.bf16.vlgmr.msra.gmra.mxu2 %vm1120_vm1, %v1211_v46  ;;  %2647 = vmatmul.msk.bf16.vlgmr.msra.gmra.mxu3 %vm1120_vm1, %v1211_v46 }
 0x1ee   : > { %v1236_v55 = vpop.f32.mrf.mxu0  ;;  %v1261_v56 = vpop.f32.mrf.mxu1 }
 0x1ef   : > { %v1515_v13 = vpack.c.bf16 %v1236_v55, %v1236_v55  ;;  %v1516_v14 = vpack.c.bf16 %v1261_v56, %v1261_v56 }
 0x1f5   : > { %v1286_v57 = vpop.f32.mrf.mxu2  ;;  %v1311_v58 = vpop.f32.mrf.mxu3 }
 0x1f6   : > { %v1238_v59 = vpop.f32.mrf.mxu0  ;;  %v1263_v60 = vpop.f32.mrf.mxu1  ;;  %v1517_v19 = vpack.c.bf16 %v1286_v57, %v1286_v57  ;;  %v1518_v20 = vpack.c.bf16 %v1311_v58, %v1311_v58 }
 0x1fd   : > { %v1288_v61 = vpop.f32.mrf.mxu2  ;;  %v1313_v62 = vpop.f32.mrf.mxu3 }
 0x1fe   : > { %v1336_v63 = vpop.f32.mrf.mxu0  ;;  %v1361_v0 = vpop.f32.mrf.mxu1 }
 0x1ff   : > { %v1519_v2 = vpack.c.bf16 %v1336_v63, %v1336_v63  ;;  %v1520_v3 = vpack.c.bf16 %v1361_v0, %v1361_v0 }
 0x201   : > { %v1528_v4 = vsel %vm1523_vm6, %v1519_v2, 0  ;;  %v1547_v5 = vsel %vm1523_vm6, %v1520_v3, 0 }
 0x202   : > { %1537 = vmatpush.bf16.xpose.msrb.mxu0 %v1528_v4  ;;  %1556 = vmatpush.bf16.xpose.msrb.mxu1 %v1547_v5 }
 0x205   : > { %v1386_v6 = vpop.f32.mrf.mxu2  ;;  %v1411_v7 = vpop.f32.mrf.mxu3 }
 0x206   : > { %v1521_v8 = vpack.c.bf16 %v1386_v6, %v1386_v6  ;;  %v1522_v10 = vpack.c.bf16 %v1411_v7, %v1411_v7  ;;  %v1338_v11 = vpop.f32.mrf.mxu0  ;;  %v1363_v12 = vpop.f32.mrf.mxu1 }
 0x208   : > { %v1566_v15 = vsel %vm1523_vm6, %v1521_v8, 0  ;;  %v1585_v16 = vsel %vm1523_vm6, %v1522_v10, 0 }
 0x209   : > { %1575 = vmatpush.bf16.xpose.msrb.mxu2 %v1566_v15  ;;  %1594 = vmatpush.bf16.xpose.msrb.mxu3 %v1585_v16 }
 0x20a   : > { %2648 = vmatmul.msk.bf16.vlgmr.msrb.gmra.mxu0 %vm1523_vm6, %v1515_v13  ;;  %2649 = vmatmul.msk.bf16.vlgmr.msrb.gmra.mxu1 %vm1523_vm6, %v1516_v14 }
 0x20d   : > { %v1388_v17 = vpop.f32.mrf.mxu2  ;;  %v1413_v18 = vpop.f32.mrf.mxu3 }
 0x20e   : > { %v1436_v21 = vpop.f32.mrf.mxu0  ;;  %v1461_v22 = vpop.f32.mrf.mxu1 }
 0x20f   : > { %v1648_v23 = vpack.c.bf16 %v1436_v21, %v1436_v21  ;;  %v1649_v24 = vpack.c.bf16 %v1461_v22, %v1461_v22 }
 0x210   : > { %2650 = vmatmul.msk.bf16.vlgmr.msrb.gmra.mxu2 %vm1523_vm6, %v1517_v19  ;;  %2651 = vmatmul.msk.bf16.vlgmr.msrb.gmra.mxu3 %vm1523_vm6, %v1518_v20 }
 0x211   : > { %v1657_v25 = vsel %vm1655_vm7, %v1648_v23, 0  ;;  %v1676_v26 = vsel %vm1655_vm7, %v1649_v24, 0 }
 0x212   : > { %1666 = vmatpush.bf16.msra.mxu0 %v1657_v25  ;;  %1685 = vmatpush.bf16.msra.mxu1 %v1676_v26 }
 0x215   : > { %v1486_v27 = vpop.f32.mrf.mxu2  ;;  %v1511_v28 = vpop.f32.mrf.mxu3 }
 0x216   : > { %v1650_v29 = vpack.c.bf16 %v1486_v27, %v1486_v27  ;;  %v1651_v30 = vpack.c.bf16 %v1511_v28, %v1511_v28  ;;  %v1438_v31 = vpop.f32.mrf.mxu0  ;;  %v1463_v32 = vpop.f32.mrf.mxu1  ;;  %v1207_v28 = vld [vmem:[%s3237_s24] sm:$0xf] }
 0x217   : > { %v1208_v32 = vld [vmem:[%s3237_s24 + $0x4] sm:$0xf] }
 0x218   : > { %v1695_v33 = vsel %vm1655_vm7, %v1650_v29, 0  ;;  %v1714_v34 = vsel %vm1655_vm7, %v1651_v30, 0  ;;  %v1737_v29 = vsel %vm1655_vm7, %v1207_v28, 0  ;;  %v1209_v30 = vld [vmem:[%s3237_s24 + $0x8] sm:$0xf] }
 0x219   : > { %1704 = vmatpush.bf16.msra.mxu2 %v1695_v33  ;;  %1723 = vmatpush.bf16.msra.mxu3 %v1714_v34  ;;  %v1775_v31 = vsel %vm1655_vm7, %v1209_v30, 0  ;;  %v1756_v33 = vsel %vm1655_vm7, %v1208_v32, 0  ;;  %v1210_v34 = vld [vmem:[%s3237_s24 + $0xc] sm:$0xf]  ;;  %s3652_s24 = sld [smem:[#allocation19_spill]] }
 0x21a   : > { %1746 = vmatpush.bf16.msrb.mxu0 %v1737_v29  ;;  %1765 = vmatpush.bf16.msrb.mxu1 %v1756_v33 }
 0x21d   : > { %v1488_v35 = vpop.f32.mrf.mxu2  ;;  %v1513_v36 = vpop.f32.mrf.mxu3  ;;  %1784 = vmatpush.bf16.msrb.mxu2 %v1775_v31 }
 0x21e   : > { %v1794_v35 = vsel %vm1655_vm7, %v1210_v34, 0 }
 0x21f   : > { %1803 = vmatpush.bf16.msrb.mxu3 %v1794_v35 }
 0x287   : > { %v1539_v38 = vpop.f32.mrf.mxu0  ;;  %v1558_v39 = vpop.f32.mrf.mxu1 }
 0x288   : > { %v1540_v40 = vadd.f32 %v1539_v38, %v1158_v37  ;;  %v1559_v42 = vadd.f32 %v1558_v39, %v1158_v37 }
 0x28a   : > { %v1600_v41 = vsel %vm1523_vm6, %v1540_v40, -inf  ;;  %v1603_v45 = vsel %vm1523_vm6, %v1559_v42, -inf }
 0x28b   : > { %1601 = vmax.xlane.f32.xlu2 %v1600_v41 }
 0x28f   : > { %v1541_v43 = vpop.f32.mrf.mxu0  ;;  %v1560_v44 = vpop.f32.mrf.mxu1 }
 0x293   : > { %v1577_v46 = vpop.f32.mrf.mxu2  ;;  %v1596_v47 = vpop.f32.mrf.mxu3  ;;  %1604 = vmax.xlane.f32.xlu2 %v1603_v45 }
 0x294   : > { %v1578_v48 = vadd.f32 %v1577_v46, %v1158_v37  ;;  %v1597_v50 = vadd.f32 %v1596_v47, %v1158_v37 }
 0x296   : > { %v1606_v49 = vsel %vm1523_vm6, %v1578_v48, -inf  ;;  %v1609_v53 = vsel %vm1523_vm6, %v1597_v50, -inf }
 0x297   : > { %1607 = vmax.xlane.f32.xlu1 %v1606_v49 }
 0x29b   : > { %v1579_v51 = vpop.f32.mrf.mxu2  ;;  %v1598_v52 = vpop.f32.mrf.mxu3 }
 0x29f   : > { %1610 = vmax.xlane.f32.xlu1 %v1609_v53 }
 0x2fe   : > { %v1602_v54 = vpop.xlane.xlu2 %1601 }
 0x2ff   : > { %v1612_v55 = vsub.f32 %v1540_v40, %v1602_v54 }
 0x301   : > { %v1616_v56 = vmul.f32 1.442695, %v1612_v55 }
 0x303   : > { %2861 = vpow2.f32 %v1616_v56 }
 0x306   : > { %v1605_v58 = vpop.xlane.xlu2 %1604 }
 0x307   : > { %v1613_v62 = vsub.f32 %v1559_v42, %v1605_v58 }
 0x309   : > { %v2862_v57 = vpop.eup %2861  ;;  %v1618_v0 = vmul.f32 1.442695, %v1613_v62 }
 0x30a   : > { %v1608_v59 = vpop.xlane.xlu1 %1607  ;;  %v1624_v60 = vsel %vm1523_vm6, %v2862_v57, 0.0 }
 0x30b   : > { %v1614_v61 = vsub.f32 %v1578_v48, %v1608_v59  ;;  %1625 = vadd.xlane.f32.xlu2 %v1624_v60 }
 0x30d   : > { %v1620_v63 = vmul.f32 1.442695, %v1614_v61 }
 0x30f   : > { %2863 = vpow2.f32 %v1620_v63 }
 0x310   : > { %2865 = vpow2.f32 %v1618_v0 }
 0x312   : > { %v1611_v2 = vpop.xlane.xlu1 %1610 }
 0x313   : > { %v1615_v3 = vsub.f32 %v1597_v50, %v1611_v2 }
 0x315   : > { %v2864_v4 = vpop.eup %2863  ;;  %v1622_v5 = vmul.f32 1.442695, %v1615_v3 }
 0x316   : > { %v1630_v6 = vsel %vm1523_vm6, %v2864_v4, 0.0  ;;  %v2866_v7 = vpop.eup %2865 }
 0x317   : > { %2867 = vpow2.f32 %v1622_v5  ;;  %1631 = vadd.xlane.f32.xlu0 %v1630_v6  ;;  %v1627_v11 = vsel %vm1523_vm6, %v2866_v7, 0.0 }
 0x31d   : > { %v2868_v8 = vpop.eup %2867 }
 0x31e   : > { %v1633_v10 = vsel %vm1523_vm6, %v2868_v8, 0.0 }
 0x31f   : > { %1634 = vadd.xlane.f32.xlu1 %v1633_v10  ;;  %1628 = vadd.xlane.f32.xlu0 %v1627_v11  ;;  %v2764_v11 = vld [vmem:[%s3652_s24 + $0x8] sm:$0xff] }
 0x37e   : > { %v1626_v12 = vpop.xlane.xlu2 %1625 }
 0x37f   : > { %2869 = vrcp.f32 %v1626_v12  ;;  %v2763_v12 = vld [vmem:[%s3652_s24] sm:$0xff] }
 0x385   : > { %v2870_v13 = vpop.eup %2869 }
 0x386   : > { %v1640_v14 = vmul.f32 %v2870_v13, %v2862_v57 }
 0x388   : > { %v1644_v15 = vpack.c.bf16 %v1640_v14, %v1640_v14 }
 0x38a   : > { %v1632_v16 = vpop.xlane.xlu0 %1631  ;;  %2652 = vmatmul.msk.bf16.vlgmr.msra.gmra.mxu0 %vm1523_vm6, %v1644_v15 }
 0x38b   : > { %2871 = vrcp.f32 %v1632_v16  ;;  %1888 = vmatpush.bf16.msra.mxu0 %v2764_v11 }
 0x38f   : > { %1889 = vmatpush.bf16.msra.mxu0 %v2763_v12  ;;  %v2775_v12 = vld [vmem:[%s3292_s4 + $0x10] sm:$0xff] }
 0x391   : > { %v2872_v17 = vpop.eup %2871 }
 0x392   : > { %v1642_v18 = vmul.f32 %v2872_v17, %v2864_v4  ;;  %v1635_v19 = vpop.xlane.xlu1 %1634  ;;  %v1629_v20 = vpop.xlane.xlu0 %1628 }
 0x393   : > { %2873 = vrcp.f32 %v1635_v19 }
 0x394   : > { %v1646_v21 = vpack.c.bf16 %v1642_v18, %v1642_v18  ;;  %2875 = vrcp.f32 %v1629_v20 }
 0x396   : > { %2654 = vmatmul.msk.bf16.vlgmr.msra.gmra.mxu2 %vm1523_vm6, %v1646_v21 }
 0x399   : > { %v2874_v22 = vpop.eup %2873 }
 0x39a   : > { %v2876_v23 = vpop.eup %2875  ;;  %v1643_v24 = vmul.f32 %v2874_v22, %v2868_v8  ;;  %v1117_v8 = vld [vmem:[%s3654_s6] sm:$0xff] }
 0x39b   : > { %v1641_v25 = vmul.f32 %v2876_v23, %v2866_v7  ;;  %v2766_v7 = vld [vmem:[%s3255_s25 + $0x8] sm:$0xff]  ;;  %v1895_v10 = vpack.c.bf16 %v1117_v8, %v1117_v8  ;;  %v2851_v22 = vld [vmem:[%s3656_s8] ss:$0 sm:$0xff] }
 0x39c   : > { %v1647_v26 = vpack.c.bf16 %v1643_v24, %v1643_v24  ;;  %v2771_v8 = vld [vmem:[%s3278_s10] sm:$0xff] }
 0x39d   : > { %v1645_v27 = vpack.c.bf16 %v1641_v25, %v1641_v25  ;;  %v2852_v25 = vld [vmem:[%s3659_s15] ss:$0 sm:$0xff] }
 0x39e   : > { %2655 = vmatmul.msk.bf16.vlgmr.msra.gmra.mxu3 %vm1523_vm6, %v1647_v26 }
 0x39f   : > { %2653 = vmatmul.msk.bf16.vlgmr.msra.gmra.mxu1 %vm1523_vm6, %v1645_v27 }
 0x3a0   : > { %1917 = vmatpush.bf16.msra.mxu1 %v2766_v7 }
 0x407   : > { %v1668_v36 = vpop.f32.mrf.mxu0 }
 0x408   : > { %v1729_v37 = vpack.c.bf16 %v1668_v36, %v1668_v36  ;;  %v2768_v36 = vld [vmem:[%s3657_s12 + $0x8] sm:$0xff] }
 0x409   : > { %1942 = vmatpush.bf16.msra.mxu2 %v2768_v36 }
 0x40a   : > { %2656 = vmatmul.msk.bf16.vlgmr.msrb.gmra.mxu0 %vm1523_vm6, %v1729_v37  ;;  %v2767_v37 = vld [vmem:[%s3657_s12] sm:$0xff] }
 0x40d   : > { %1943 = vmatpush.bf16.msra.mxu2 %v2767_v37 }
 0x40f   : > { %v1670_v38 = vpop.f32.mrf.mxu0 }
 0x410   : > { %v1849_v38 = vld [vmem:[%s3661_s19] sm:$0xff] }
 0x419   : > { %v1706_v39 = vpop.f32.mrf.mxu2 }
 0x41a   : > { %v1731_v40 = vpack.c.bf16 %v1706_v39, %v1706_v39 }
 0x41c   : > { %v1687_v41 = vpop.f32.mrf.mxu1  ;;  %2658 = vmatmul.msk.bf16.vlgmr.msrb.gmra.mxu2 %vm1523_vm6, %v1731_v40 }
 0x41d   : > { %v1730_v42 = vpack.c.bf16 %v1687_v41, %v1687_v41 }
 0x41f   : > { %2657 = vmatmul.msk.bf16.vlgmr.msrb.gmra.mxu1 %vm1523_vm6, %v1730_v42 }
 0x421   : > { %v1708_v43 = vpop.f32.mrf.mxu2  ;;  %v1725_v44 = vpop.f32.mrf.mxu3 }
 0x422   : > { %v1732_v45 = vpack.c.bf16 %v1725_v44, %v1725_v44 }
 0x424   : > { %v1689_v46 = vpop.f32.mrf.mxu1  ;;  %2659 = vmatmul.msk.bf16.vlgmr.msrb.gmra.mxu3 %vm1523_vm6, %v1732_v45 }
 0x429   : > { %v1727_v47 = vpop.f32.mrf.mxu3 }
 0x42c   : > { %2686 = vmatmul.msk.bf16.vlgmr.msra.gmra.mxu2 %vm1120_vm1, %v1895_v10 }
 0x487   : > { %v1748_v48 = vpop.f32.mrf.mxu0 }
 0x488   : > { %v1809_v53 = vsel %vm1120_vm1, %v1748_v48, 0.0 }
 0x48f   : > { %v1750_v49 = vpop.f32.mrf.mxu0 }
 0x49c   : > { %v1767_v50 = vpop.f32.mrf.mxu1 }
 0x49d   : > { %v1810_v52 = vsel %vm1120_vm1, %v1767_v50, 0.0 }
 0x49e   : > { %v1811_v56 = vadd.f32 %v1810_v52, %v1809_v53  ;;  %v2770_v52 = vld [vmem:[%s3662_s17 + $0x8] sm:$0xff] }
 0x49f   : > { %v1786_v51 = vpop.f32.mrf.mxu2 }
 0x4a0   : > { %v1812_v54 = vsel %vm1120_vm1, %v1786_v51, 0.0 }
 0x4a1   : > { %v1813_v57 = vadd.f32 %v1812_v54, %v1811_v56 }
 0x4a4   : > { %v1769_v55 = vpop.f32.mrf.mxu1 }
 0x4a7   : > { %v1788_v58 = vpop.f32.mrf.mxu2  ;;  %v1805_v59 = vpop.f32.mrf.mxu3 }
 0x4a8   : > { %v1814_v60 = vsel %vm1120_vm1, %v1805_v59, 0.0 }
 0x4a9   : > { %v1815_v61 = vadd.f32 %v1814_v60, %v1813_v57  ;;  %v2769_v57 = vld [vmem:[%s3662_s17] sm:$0xff] }
 0x4ab   : > { %v3398_v62 = vadd.f32 %v1815_v61, %v3296_v1  ;;  %v2765_v1 = vld [vmem:[%s3255_s25] sm:$0xff] }
 0x4ac   : > { %1918 = vmatpush.bf16.msra.mxu1 %v2765_v1  ;;  %v2772_v1 = vld [vmem:[%s3278_s10 + $0x8] sm:$0xff] }
 0x4ad   : > { %v1819_v63 = vsel %vm1120_vm1, %v3398_v62, 0.0  ;;  %2094 = vmatpush.bf16.msrb.mxu2 %v2772_v1 }
 0x4ae   : > { %1820 = vadd.xlane.f32.xlu1 %v1819_v63 }
 0x4af   : > { %v1807_v0 = vpop.f32.mrf.mxu3  ;;  %2677 = vmatmul.msk.bf16.vlgmr.msra.gmra.mxu1 %vm1120_vm1, %v1895_v10  ;;  %v1945_v43 = vpop.f32.mrf.mxu2  ;;  %v2776_v10 = vld [vmem:[%s3292_s4 + $0x18] sm:$0xff] }
 0x4b0   : > { %v1982_v44 = vpack.c.bf16 %v1945_v43, %v1945_v43  ;;  %2024 = vmatpush.bf16.msrb.mxu1 %v2770_v52 }
 0x4b1   : > { %2095 = vmatpush.bf16.msrb.mxu2 %v2771_v8 }
 0x4b2   : > { %v1987_v46 = vsel %vm1655_vm7, %v1982_v44, 0 }
 0x4b3   : > { %1996 = vmatpush.bf16.msrb.mxu0 %v1987_v46 }
 0x4b4   : > { %2025 = vmatpush.bf16.msrb.mxu1 %v2769_v57 }
 0x4b7   : > { %v1947_v49 = vpop.f32.mrf.mxu2 }
 0x521   : > { %v1821_v2 = vpop.xlane.xlu1 %1820 }
 0x522   : > { %v1822_v3 = vmul.f32 %v1821_v2, %v3300_v9 }
 0x524   : > { %v1823_v4 = vsub.f32 %v3398_v62, %v1822_v3 }
 0x526   : > { %v1824_v5 = vmul.f32 %v1823_v4, %v1823_v4 }
 0x528   : > { %v1825_v6 = vsel %vm1120_vm1, %v1824_v5, 0.0 }
 0x529   : > { %1826 = vadd.xlane.f32.xlu2 %v1825_v6 }
 0x52c   : > { %v1920_v29 = vpop.f32.mrf.mxu1 }
 0x52d   : > { %v1950_v30 = vpack.c.bf16 %v1920_v29, %v1920_v29  ;;  %v2855_v29 = vld [vmem:[%s1099_s7] ss:$0 sm:$0xff] }
 0x52f   : > { %v1955_v31 = vsel %vm1120_vm1, %v1950_v30, 0 }
 0x530   : > { %1964 = vmatpush.bf16.xpose.msra.mxu3 %v1955_v31 }
 0x534   : > { %v1922_v32 = vpop.f32.mrf.mxu1 }
 0x538   : > { %2147 = vmatpush.bf16.msrb.mxu3 %v2776_v10 }
 0x53c   : > { %2148 = vmatpush.bf16.msrb.mxu3 %v2775_v12 }
 0x59c   : > { %v1827_v13 = vpop.xlane.xlu2 %1826 }
 0x59d   : > { %v1828_v14 = vmul.f32 %v1827_v13, %v3300_v9 }
 0x59f   : > { %v1829_v15 = vadd.f32 1e-06, %v1828_v14 }
 0x5a1   : > { %2877 = vrsqrt.f32 %v1829_v15  ;;  %vm1836_vm9 = vweird.f32 %v1829_v15 }
 0x5a7   : > { %v2878_v16 = vpop.eup %2877 }
 0x5a8   : > { %v1831_v17 = vmul.f32 %v2878_v16, %v1829_v15  ;;  %vm1837_vm8 = vweird.f32 %v2878_v16 }
 0x5a9   : > { %vm1838_vm10 = vmor %vm1836_vm9, %vm1837_vm8 }
 0x5aa   : > { %v1832_v18 = vmul.f32 %v2878_v16, %v1831_v17 }
 0x5ac   : > { %v1833_v19 = vmul.f32 0.5, %v1832_v18 }
 0x5ae   : > { %v1834_v20 = vsub.f32 1.5, %v1833_v19 }
 0x5b0   : > { %v1835_v21 = vmul.f32 %v2878_v16, %v1834_v20  ;;  %v2853_v20 = vld [vmem:[%s3664_s16] ss:$0 sm:$0xff] }
 0x5b2   : > { %v1839_v23 = vsel %vm1838_vm10, %v2878_v16, %v1835_v21 }
 0x5b3   : > { %v1840_v24 = vmul.f32 %v1839_v23, %v1823_v4  ;;  %v2854_v23 = vld [vmem:[%s1091_s20] ss:$0 sm:$0xff] }
 0x5b5   : > { %v1844_v26 = vmul.f32 %v2851_v22, %v1840_v24 }
 0x5b7   : > { %v1848_v27 = vadd.f32 %v2852_v25, %v1844_v26 }
 0x5b9   : > { %v1866_v28 = vpack.c.bf16 %v1848_v27, %v1848_v27  ;;  %v2774_v27 = vld [vmem:[%s3292_s4 + $0x8] sm:$0xff] }
 0x5ba   : > { %2149 = vmatpush.bf16.msrb.mxu3 %v2774_v27 }
 0x5bb   : > { %2668 = vmatmul.msk.bf16.vlgmr.msra.gmra.mxu0 %vm1120_vm1, %v1866_v28  ;;  %v2773_v28 = vld [vmem:[%s3292_s4] sm:$0xff]  ;;  %s3668_s4 = sld [smem:[#allocation9_spill]] }
 0x5be   : > { %2150 = vmatpush.bf16.msrb.mxu3 %v2773_v28 }
 0x5c1   : > { %p2724_p1 = scmp.ne.s32.totalorder %s3668_s4, 1 }
 0x5c2   : > { %s3670_s12 = sld [smem:[#allocation45_spill]] (!%p2724_p1) }
 0x638   : > { %v1891_v33 = vpop.f32.mrf.mxu0 }
 0x639   : > { %v1949_v34 = vpack.c.bf16 %v1891_v33, %v1891_v33 }
 0x63b   : > { %2687 = vmatmul.msk.bf16.vlgmr.msra.gmra.mxu3 %vm1120_vm1, %v1949_v34 }
 0x640   : > { %v1893_v35 = vpop.f32.mrf.mxu0 }
 0x641   : > { %v2856_v35 = vld [vmem:[%s1107_s21] ss:$0 sm:$0xff]  ;;  %s3669_s21 = sld [smem:[#allocation44_spill]] (!%p2724_p1) }
 0x6be   : > { %v1966_v39 = vpop.f32.mrf.mxu3 }
 0x6bf   : > { %v1967_v40 = vadd.f32 %v1966_v39, %v1849_v38 }
 0x6c1   : > { %v1970_v41 = vsel %vm1523_vm6, %v1967_v40, -inf }
 0x6c2   : > { %1971 = vmax.xlane.f32.xlu0 %v1970_v41 }
 0x6c6   : > { %v1968_v42 = vpop.f32.mrf.mxu3 }
 0x735   : > { %v1972_v45 = vpop.xlane.xlu0 %1971 }
 0x736   : > { %v1973_v47 = vsub.f32 %v1967_v40, %v1972_v45 }
 0x738   : > { %v1974_v48 = vmul.f32 1.442695, %v1973_v47 }
 0x73a   : > { %2879 = vpow2.f32 %v1974_v48 }
 0x740   : > { %v2880_v50 = vpop.eup %2879 }
 0x741   : > { %v1976_v51 = vsel %vm1523_vm6, %v2880_v50, 0.0 }
 0x742   : > { %1977 = vadd.xlane.f32.xlu1 %v1976_v51 }
 0x7b5   : > { %v1978_v53 = vpop.xlane.xlu1 %1977 }
 0x7b6   : > { %2881 = vrcp.f32 %v1978_v53 }
 0x7bc   : > { %v2882_v54 = vpop.eup %2881 }
 0x7bd   : > { %v1980_v55 = vmul.f32 %v2882_v54, %v2880_v50 }
 0x7bf   : > { %v1981_v56 = vpack.c.bf16 %v1980_v55, %v1980_v55 }
 0x7c1   : > { %2688 = vmatmul.msk.bf16.vlgmr.msrb.gmra.mxu0 %vm1523_vm6, %v1981_v56 }
 0x83e   : > { %v1998_v58 = vpop.f32.mrf.mxu0 }
 0x83f   : > { %v2002_v59 = vpack.c.bf16 %v1998_v58, %v1998_v58 }
 0x841   : > { %2697 = vmatmul.msk.bf16.vlgmr.msrb.gmra.mxu1 %vm1120_vm1, %v2002_v59 }
 0x846   : > { %v2000_v60 = vpop.f32.mrf.mxu0 }
 0x8be   : > { %v2027_v61 = vpop.f32.mrf.mxu1 }
 0x8bf   : > { %v2031_v63 = vadd.f32 %v2027_v61, %v3398_v62 }
 0x8c1   : > { %v2034_v0 = vsel %vm1120_vm1, %v2031_v63, 0.0 }
 0x8c2   : > { %2035 = vadd.xlane.f32.xlu2 %v2034_v0 }
 0x8c6   : > { %v2029_v2 = vpop.f32.mrf.mxu1 }
 0x935   : > { %v2036_v3 = vpop.xlane.xlu2 %2035 }
 0x936   : > { %v2037_v4 = vmul.f32 %v2036_v3, %v3300_v9 }
 0x938   : > { %v2038_v5 = vsub.f32 %v2031_v63, %v2037_v4 }
 0x93a   : > { %v2039_v6 = vmul.f32 %v2038_v5, %v2038_v5 }
 0x93c   : > { %v2040_v7 = vsel %vm1120_vm1, %v2039_v6, 0.0 }
 0x93d   : > { %2041 = vadd.xlane.f32.xlu0 %v2040_v7 }
 0x9b0   : > { %v2042_v62 = vpop.xlane.xlu0 %2041 }
 0x9b1   : > { %v2043_v11 = vmul.f32 %v2042_v62, %v3300_v9 }
 0x9b3   : > { %v2044_v13 = vadd.f32 1e-06, %v2043_v11 }
 0x9b5   : > { %2883 = vrsqrt.f32 %v2044_v13  ;;  %vm2051_vm12 = vweird.f32 %v2044_v13 }
 0x9bb   : > { %v2884_v14 = vpop.eup %2883 }
 0x9bc   : > { %v2046_v15 = vmul.f32 %v2884_v14, %v2044_v13  ;;  %vm2052_vm11 = vweird.f32 %v2884_v14 }
 0x9bd   : > { %vm2053_vm13 = vmor %vm2051_vm12, %vm2052_vm11 }
 0x9be   : > { %v2047_v16 = vmul.f32 %v2884_v14, %v2046_v15 }
 0x9c0   : > { %v2048_v17 = vmul.f32 0.5, %v2047_v16 }
 0x9c2   : > { %v2049_v18 = vsub.f32 1.5, %v2048_v17 }
 0x9c4   : > { %v2050_v19 = vmul.f32 %v2884_v14, %v2049_v18 }
 0x9c6   : > { %v2054_v21 = vsel %vm2053_vm13, %v2884_v14, %v2050_v19 }
 0x9c7   : > { %v2055_v22 = vmul.f32 %v2054_v21, %v2038_v5 }
 0x9c9   : > { %v2059_v24 = vmul.f32 %v2853_v20, %v2055_v22 }
 0x9cb   : > { %v2063_v25 = vadd.f32 %v2854_v23, %v2059_v24 }
 0x9cd   : > { %v2064_v26 = vpack.c.bf16 %v2063_v25, %v2063_v25 }
 0x9cf   : > { %2706 = vmatmul.msk.bf16.vlgmr.msrb.gmra.mxu2 %vm1120_vm1, %v2064_v26 }
 0xa52   : > { %v2097_v30 = vpop.f32.mrf.mxu2 }
 0xa53   : > { %v2098_v31 = vadd.f32 %v2855_v29, %v2097_v30 }
 0xa55   : > { %v2101_v32 = vmax.f32 %v2098_v31, 0.0 }
 0xa57   : > { %v2102_v33 = vpack.c.bf16 %v2101_v32, %v2101_v32 }
 0xa59   : > { %2723 = vmatmul.msk.bf16.vlgmr.msrb.gmra.mxu3 %vm2139_vm14, %v2102_v33 }
 0xa5a   : > { %v2099_v34 = vpop.f32.mrf.mxu2 }
 0xadc   : > { %v2152_v36 = vpop.f32.mrf.mxu3 }
 0xadd   : > { %v2153_v37 = vadd.f32 %v2856_v35, %v2152_v36 }
 0xadf   : > { %v2156_v38 = vadd.f32 %v2153_v37, %v2031_v63 }
 0xae0   : > { %2161 = sbr.rel (%p2724_p1) target bundleno = 3058 (0xbf2), region = 124 }
 0xae1   : > { %2157 = vst.msk [vmem:[#allocation2] sm:$0xff] %vm1120_vm1, %v2156_v38 }
 0xae4   : > { %v2154_v39 = vpop.f32.mrf.mxu3 }
 0xae5   : > { %v2164_v40 = vsel %vm1120_vm1, %v2156_v38, 0.0  ;;  %v2885_v55 = vld [vmem:[%s3669_s21] ss:$0 sm:$0xff] }
 0xae6   : > { %2165 = vadd.xlane.f32.xlu0 %v2164_v40 }
 0xb59   : > { %v2166_v41 = vpop.xlane.xlu0 %2165 }
 0xb5a   : > { %v2167_v42 = vmul.f32 %v2166_v41, %v3300_v9 }
 0xb5c   : > { %v2168_v43 = vsub.f32 %v2156_v38, %v2167_v42 }
 0xb5e   : > { %v2169_v44 = vmul.f32 %v2168_v43, %v2168_v43 }
 0xb60   : > { %v2170_v45 = vsel %vm1120_vm1, %v2169_v44, 0.0 }
 0xb61   : > { %2171 = vadd.xlane.f32.xlu0 %v2170_v45 }
 0xbd4   : > { %v2172_v46 = vpop.xlane.xlu0 %2171 }
 0xbd5   : > { %v2173_v47 = vmul.f32 %v2172_v46, %v3300_v9  ;;  %v2886_v9 = vld [vmem:[%s3670_s12] ss:$0 sm:$0xff] }
 0xbd7   : > { %v2174_v48 = vadd.f32 1e-06, %v2173_v47 }
 0xbd9   : > { %2887 = vrsqrt.f32 %v2174_v48  ;;  %vm2181_vm0 = vweird.f32 %v2174_v48 }
 0xbdf   : > { %v2888_v49 = vpop.eup %2887 }
 0xbe0   : > { %v2176_v50 = vmul.f32 %v2888_v49, %v2174_v48  ;;  %vm2182_vm15 = vweird.f32 %v2888_v49 }
 0xbe1   : > { %vm2183_vm2 = vmor %vm2181_vm0, %vm2182_vm15 }
 0xbe2   : > { %v2177_v51 = vmul.f32 %v2888_v49, %v2176_v50 }
 0xbe4   : > { %v2178_v52 = vmul.f32 0.5, %v2177_v51 }
 0xbe6   : > { %v2179_v53 = vsub.f32 1.5, %v2178_v52 }
 0xbe8   : > { %v2180_v54 = vmul.f32 %v2888_v49, %v2179_v53 }
 0xbea   : > { %v2184_v56 = vsel %vm2183_vm2, %v2888_v49, %v2180_v54 }
 0xbeb   : > { %v2185_v57 = vmul.f32 %v2184_v56, %v2168_v43 }
 0xbed   : > { %v2189_v58 = vmul.f32 %v2885_v55, %v2185_v57 }
 0xbef   : > { %v2193_v59 = vadd.f32 %v2886_v9, %v2189_v58 }
 0xbf1   : > { %2194 = vst.msk [vmem:[%s1017_s9] sm:$0xff] %vm1120_vm1, %v2193_v59 }
 0xbf2 PF: > { %s3671_s11 = sld [smem:[#allocation10_spill]]  ;;  %s2208_s17 = sshll.u32 %s1017_s9, 4  ;;  %s2209_s17 = int_to_ptr.vmem [resolvable:$true] %s2208_s17 }
 0xbf3   : > { %s3672_s13 = sld [smem:[#allocation7_spill]] }
 0xbf4   : > { %s3674_s22 = sld [smem:[#allocation46_spill]] }
 0xbf8   : > { %s2726_s15 = sshll.u32 %s3671_s11, 3 }
 0xbf9   : > { %s3675_s1 = sand.u32 1, %s3672_s13  }
 0xbfa   : > { %s2206_s19 = scalar_lea.hbm %s3674_s22, %s2726_s15  ;;  %s2196_s3 = scalar_lea.sflag [#allocation4], %s3675_s1 }
 0xbfb   : > { %s2210_s10 = sshll.u32 %s2206_s19, 4  ;;  %s2909_s29 = scalar_lea.hbm %s3674_s22, 16  ;;  %s2211_s10 = int_to_ptr.hbm [resolvable:$true] %s2210_s10 }
 0xbfc   : > { %s2903_s16 = sshra.s32 %s2211_s10, 4  ;;  %s2904_s16 = int_to_ptr.hbm [resolvable:$true] %s2903_s16 }
 0xbfd   : > { %s2905_s27 = scalar_lea.hbm %s2904_s16, 8  ;;  %p2910_p6 = scmp.lt.s32.totalorder %s2904_s16, %s3674_s22 }
 0xbfe   : > { %p2906_p2 = scmp.ne.s32.totalorder %s2904_s16, %s2905_s27  ;;  %p2911_p7 = scmp.lt.s32.totalorder %s2909_s29, %s2905_s27 }
 0xc00   : > { %p2907_p4 = pnand %p2906_p2, %p3160_p3  ;;  %p2912_p8 = por %p2911_p7, %p2910_p6 }
 0xc02   : > { %p2908_p5 = pneg %p2907_p4 }
 0xc04   : > { %p2913_p10 = pnand %p2912_p8, %p2908_p5 }
 0xc06   : > { %2916 = shalt.err (!%p2913_p10)
}
 0xc07   : > { %2777 = dma.vmem_to_hbm [thread:$0]  (%p3160_p3), %s2209_s17, 128, %s2211_s10, %s2196_s3  }
 0xc08 PF: > { %s3676_s2 = sld [smem:[#allocation13_spill]] }
 0xc09   : > { %s3677_s9 = sld [smem:[#allocation6_spill]] }
 0xc0e   : > { %p2783_p11 = scmp.ge.s32.totalorder %s3676_s2, 2 }
 0xc0f   : > { %s2222_s25 = sand.u32 1, %s3677_s9  }
 0xc10   : > { %p2780_p12 = pnand %p2783_p11, %p3170_p9  ;;  %s2223_s28 = scalar_lea.sflag [#allocation4], %s2222_s25 }
 0xc12   : > { %p2781_p13 = pneg %p2780_p12 }
 0xc14   : > { %2950 = dma.done.wait (%p2781_p13), %s2223_s28, 128  }
 0xc15   : > { %2952 = vsyncadd (%p2781_p13), %s2223_s28, 4294967168  ;;  %s37_s0 = sadd.s32 1, %s3676_s2   ;;  %s3679_s5 = sld [smem:[#allocation7_spill]] }
 0xc16   : > { %p34_p0 = scmp.ge.s32.totalorder %s37_s0, 6   ;;  %s3680_s26 = sld [smem:[#allocation8_spill]] }
 0xc17   : > { %s3681_s27 = sld [smem:[#allocation18_spill]] }
 0xc18   : > { %s3682_s28 = sld [smem:[#allocation11_spill]]  ;;  %36 = sbr.rel (!%p34_p0) target bundleno = 31 (0x1f), region = 222 }
 0xc19   : > { %s3683_s6 = sld [smem:[#allocation12_spill]] }
 0xc1a   : > { %s3684_s2 = sld [smem:[#allocation14_spill]] }
 0xc1b   : > { %s3685_s29 = sld [smem:[#allocation16_spill]] }
 0xc1d   :  { %2229 = vsyncpa [#allocation4], 1 }
 0xc1e   :  { %2231 = vsyncpa [#allocation4 + $0x1], 1 }

</bundles_post_ra>
